<compile_context>
chip_gen: v5e
topology: v5e:2x2
jax: 0.10.0
libtpu: 0.0.40
codegen_flags: <defaults>
</compile_context>

<pallas_src>
import functools
import math

import jax
import jax.numpy as jnp
import numpy as np
from jax.experimental import pallas as pl
from jax.experimental.pallas import tpu as pltpu

LANE = 128  # padded output feature width


# ------------------------------- in-kernel math ------------------------------

def _ssp(v):
    # ShiftedSoftPlus: softplus(x) - log(2), numerically stable, plain log/exp.
    return (jnp.maximum(v, 0.0)
            + jnp.log(1.0 + jnp.exp(-jnp.abs(v)))
            - jnp.float32(math.log(2.0)))


def _silu(v):
    return v * jax.nn.sigmoid(v)


# ------------------------------- Pallas kernel -------------------------------

def _interaction_kernel(
    hx_ref, h_ref, emb_ref, sh_ref, r_ref, src_ref, dst_ref,
    wl1_ref, fcw1_ref, fcw2_ref, nvec_ref,
    raw1_ref, rab1_ref, raw2_ref, rab2_ref, raw3_ref, rab3_ref,
    raw4_ref, rab4_ref, wl2_ref, wsc_ref,
    out_ref,
    hlin_ref, acc_ref,
    *, inv_sqrt_b, inv_sqrt_hf, inv_sqrt_c, inv_sqrt_ca,
):
    f32 = jnp.float32
    bf16 = jnp.bfloat16
    step = pl.program_id(0)
    n_nodes = h_ref.shape[0]
    te = src_ref.shape[0]

    # ---- step 0: zero accumulator, compute linear_1(h) once (bf16 cache) -----
    @pl.when(step == 0)
    def _init():
        acc_ref[...] = jnp.zeros(acc_ref.shape, f32)
        hlin_ref[...] = (jnp.dot(h_ref[...], wl1_ref[...],
                                 preferred_element_type=f32)
                         * f32(inv_sqrt_c)).astype(bf16)

    # ---- fc: per-edge tensor-product weights from radial embeddings ----------
    t = _ssp(jnp.dot(emb_ref[...], fcw1_ref[...],
                     preferred_element_type=f32) * f32(inv_sqrt_b))            # (TE, HF)
    weight = (jnp.dot(t, fcw2_ref[...], preferred_element_type=f32)
              * f32(inv_sqrt_hf))                                              # (TE, CP)

    # ---- gather linear_1(h)[edge_src] via bf16 one-hot MXU matmul -------------
    onehot_src = (jax.lax.broadcasted_iota(jnp.int32, (te, n_nodes), 1)
                  == src_ref[...]).astype(bf16)                                # (TE, N)
    h_src = jnp.dot(onehot_src, hlin_ref[...], preferred_element_type=f32)     # (TE, CP)

    # ---- 'uvu' tensor product with scalar edge attr: per-channel product -----
    # edge_sh is folded into the scatter scale below (scalar associativity).
    edge_feats = h_src * weight                                                # (TE, CP)

    # ---- RadialAttention, transposed layout (edges on lanes) -----------------
    r = r_ref[...]                                                             # (1, TE)
    inv_r = pl.reciprocal(r, approx=True)
    inp = jnp.sin(nvec_ref[...] * r) * inv_r                                   # (NR, TE)
    a = _silu(jnp.dot(raw1_ref[...], inp, preferred_element_type=f32) + rab1_ref[...])
    a = _silu(jnp.dot(raw2_ref[...], a, preferred_element_type=f32) + rab2_ref[...])
    a = _silu(jnp.dot(raw3_ref[...], a, preferred_element_type=f32) + rab3_ref[...])
    att = jnp.sum(a * raw4_ref[...], axis=0, keepdims=True) + rab4_ref[...]    # (1, TE)

    # ---- scatter-add over edge_dst: one-hot scaled by (attention * edge_sh) ---
    # Node-index iota (dimension=0): onehot_dst[n, e] = (n == dst[e]).
    scale = att * sh_ref[...]                                                  # (1, TE)
    onehot_dst = jnp.where(
        jax.lax.broadcasted_iota(jnp.int32, (n_nodes, te), 0) == dst_ref[...],
        scale, f32(0.0)).astype(bf16)                                          # (N, TE)
    acc_ref[...] += jnp.dot(onehot_dst, edge_feats.astype(bf16),
                            preferred_element_type=f32)                        # (N, CP)

    # ---- last step: linear_2 + self-connection, lane-dense (N, 128) store ----
    @pl.when(step == pl.num_programs(0) - 1)
    def _finalize():
        sc = (jnp.dot(hx_ref[...], wsc_ref[...], preferred_element_type=f32)
              * f32(inv_sqrt_ca))
        h_out = (jnp.dot(acc_ref[...], wl2_ref[...],
                         preferred_element_type=f32) * f32(inv_sqrt_c))
        out_ref[...] = h_out + sc


# ------------------------------- wrapper --------------------------------------

def attention_interaction_block(x, h, edge_length_embeddings, edge_sh, edge_index,
                                r_ijs, params, *, edge_tile=256):
    f32 = jnp.float32
    N, C = h.shape
    A = x.shape[1]
    E = r_ijs.shape[0]
    B = edge_length_embeddings.shape[1]
    HF = params["fc_W1"].shape[1]
    NR = params["n_vec"].shape[1]
    RH = params["ra_W1"].shape[1]

    CP = LANE
    TE = edge_tile
    n_tiles = pl.cdiv(E, TE)
    E_pad = n_tiles * TE

    # ---- edge tensors: pad edge axis to a multiple of TE ----------------------
    # Padded edges have edge_sh = 0 -> exactly zero contribution; r = 1 avoids 1/0.
    emb = jnp.zeros((E_pad, B), f32).at[:E].set(edge_length_embeddings.astype(f32))
    sh_t = jnp.zeros((1, E_pad), f32).at[:, :E].set(
        jnp.asarray(edge_sh, f32).reshape(1, E))
    r_t = jnp.ones((1, E_pad), f32).at[:, :E].set(
        jnp.asarray(r_ijs, f32).reshape(1, E))
    src = jnp.zeros((E_pad, 1), jnp.int32).at[:E].set(
        edge_index[1].astype(jnp.int32).reshape(E, 1))
    dst_t = jnp.zeros((1, E_pad), jnp.int32).at[:, :E].set(
        edge_index[0].astype(jnp.int32).reshape(1, E))

    # ---- node features / weights: natural inner widths, outputs padded to 128 -
    h_f = h.astype(f32)                                                   # (N, C)
    x_f = x.astype(f32)                                                   # (N, A)
    # hx[n, j*C + i] = x[n, j] * h[n, i]  (matches W_sc[j, i, k] flattening)
    hx = (x_f[:, :, None] * h_f[:, None, :]).reshape(N, A * C)           # (N, A*C)

    def _pad_cols(a, cols):
        r0, c0 = a.shape
        return jnp.zeros((r0, cols), f32).at[:, :c0].set(a.astype(f32))

    wl1 = _pad_cols(params["W_lin1"], CP)                                 # (C, CP)
    wl2 = jnp.zeros((CP, CP), f32).at[:C, :C].set(params["W_lin2"].astype(f32))
    fcw1 = params["fc_W1"].astype(f32)                                    # (B, HF)
    fcw2 = _pad_cols(params["fc_W2"], CP)                                 # (HF, CP)
    wsc = _pad_cols(params["W_sc"].astype(f32).reshape(A * C, C), CP)     # (A*C, CP)

    nvec_t = params["n_vec"].astype(f32).reshape(NR, 1)
    raw1_t = params["ra_W1"].astype(f32).T                                # (RH, NR)
    rab1_t = params["ra_b1"].astype(f32).reshape(RH, 1)
    raw2_t = params["ra_W2"].astype(f32).T
    rab2_t = params["ra_b2"].astype(f32).reshape(RH, 1)
    raw3_t = params["ra_W3"].astype(f32).T
    rab3_t = params["ra_b3"].astype(f32).reshape(RH, 1)
    raw4_c = params["ra_W4"].astype(f32).reshape(RH, 1)                   # column
    rab4 = params["ra_b4"].astype(f32).reshape(1, 1)

    inputs = (hx, h_f, emb, sh_t, r_t, src, dst_t,
              wl1, fcw1, fcw2, nvec_t,
              raw1_t, rab1_t, raw2_t, rab2_t, raw3_t, rab3_t, raw4_c, rab4,
              wl2, wsc)

    def _const(a):   # full-array block, resident across all edge tiles
        return pl.BlockSpec(a.shape, lambda e: (0, 0))

    in_specs = [
        _const(hx),                                 # hx     (N, A*C)
        _const(h_f),                                # h      (N, C)
        pl.BlockSpec((TE, B), lambda e: (e, 0)),    # emb    (TE, B)
        pl.BlockSpec((1, TE), lambda e: (0, e)),    # sh_t   (1, TE)
        pl.BlockSpec((1, TE), lambda e: (0, e)),    # r_t    (1, TE)
        pl.BlockSpec((TE, 1), lambda e: (e, 0)),    # src    (TE, 1)
        pl.BlockSpec((1, TE), lambda e: (0, e)),    # dst_t  (1, TE)
    ] + [_const(a) for a in inputs[7:]]             # all weights / biases

    kernel = functools.partial(
        _interaction_kernel,
        inv_sqrt_b=1.0 / math.sqrt(B),
        inv_sqrt_hf=1.0 / math.sqrt(HF),
        inv_sqrt_c=1.0 / math.sqrt(C),
        inv_sqrt_ca=1.0 / math.sqrt(C * A),
    )

    flops = 2 * (N * C * CP + N * (A * C) * CP + N * CP * CP
                 + E_pad * (B * HF + HF * CP)
                 + E_pad * (NR * RH + 2 * RH * RH + RH)
                 + 2 * E_pad * N * CP)
    transcendentals = E_pad * (NR + 2 * HF + 3 * RH + 1)
    bytes_accessed = 4 * (sum(int(np.prod(a.shape)) for a in inputs) + N * CP)

    out_p = pl.pallas_call(
        kernel,
        out_shape=jax.ShapeDtypeStruct((N, CP), f32),
        grid=(n_tiles,),
        in_specs=in_specs,
        out_specs=pl.BlockSpec((N, CP), lambda e: (0, 0)),
        scratch_shapes=[pltpu.VMEM((N, CP), jnp.bfloat16),  # linear_1(h) cache
                        pltpu.VMEM((N, CP), f32)],          # scatter accumulator
        compiler_params=pltpu.CompilerParams(dimension_semantics=("arbitrary",)),
        cost_estimate=pl.CostEstimate(flops=int(flops),
                                      transcendentals=int(transcendentals),
                                      bytes_accessed=int(bytes_accessed)),
    )(*inputs)

    return out_p[:, :C]


# ------------------------------- pure-JAX reference ---------------------------

def _reference(x, h, emb, edge_sh, edge_index, r_ijs, p):
    hp = jax.lax.Precision.HIGHEST
    N, C = h.shape
    A = x.shape[1]
    B = emb.shape[1]
    HF = p["fc_W1"].shape[1]
    src = edge_index[1]
    dst = edge_index[0]

    ssp = lambda v: jax.nn.softplus(v) - math.log(2.0)
    silu = lambda v: v * jax.nn.sigmoid(v)

    weight = ssp(jnp.dot(emb, p["fc_W1"], precision=hp) / math.sqrt(B))
    weight = jnp.dot(weight, p["fc_W2"], precision=hp) / math.sqrt(HF)

    sc = jnp.einsum("ni,nj,jik->nk", h, x, p["W_sc"], precision=hp) / math.sqrt(C * A)

    h_lin = jnp.dot(h, p["W_lin1"], precision=hp) / math.sqrt(C)
    h_src = jnp.take(h_lin, src, axis=0)
    edge_feats = h_src * edge_sh.reshape(-1, 1) * weight

    r = r_ijs.reshape(-1, 1)
    inp = jnp.sin(p["n_vec"] * r) / r
    a = silu(jnp.dot(inp, p["ra_W1"], precision=hp) + p["ra_b1"])
    a = silu(jnp.dot(a, p["ra_W2"], precision=hp) + p["ra_b2"])
    a = silu(jnp.dot(a, p["ra_W3"], precision=hp) + p["ra_b3"])
    att = jnp.dot(a, p["ra_W4"], precision=hp) + p["ra_b4"]

    h_agg = jax.ops.segment_sum(edge_feats * att, dst, num_segments=N)
    return jnp.dot(h_agg, p["W_lin2"], precision=hp) / math.sqrt(C) + sc


# ------------------------------- main ------------------------------------------

if __name__ == "__main__":
    # nodes, edges, feats, node attrs, radial basis, fc hidden, radial n_input, radial hidden
    N, E, C, A, B, HF, NR, RH = 16, 200, 16, 4, 8, 8, 8, 8

    key = jax.random.PRNGKey(0)
    keys = jax.random.split(key, 20)

    x = jax.random.normal(keys[0], (N, A), jnp.float32)
    h = jax.random.normal(keys[1], (N, C), jnp.float32)
    edge_length_embeddings = jax.random.normal(keys[2], (E, B), jnp.float32)
    edge_sh = jnp.full((E, 1), 1.0 / math.sqrt(4.0 * math.pi), jnp.float32)  # l=0 SH
    edge_index = jax.random.randint(keys[3], (2, E), 0, N, jnp.int32)
    r_ijs = jax.random.uniform(keys[4], (E,), jnp.float32, 0.5, 2.0)

    s = 0.3
    params = {
        "W_lin1": s * jax.random.normal(keys[5], (C, C), jnp.float32),
        "fc_W1": s * jax.random.normal(keys[6], (B, HF), jnp.float32),
        "fc_W2": s * jax.random.normal(keys[7], (HF, C), jnp.float32),
        "n_vec": (jnp.arange(1, NR + 1, dtype=jnp.float32) * math.pi).reshape(1, NR),
        "ra_W1": s * jax.random.normal(keys[8], (NR, RH), jnp.float32),
        "ra_b1": s * jax.random.normal(keys[9], (1, RH), jnp.float32),
        "ra_W2": s * jax.random.normal(keys[10], (RH, RH), jnp.float32),
        "ra_b2": s * jax.random.normal(keys[11], (1, RH), jnp.float32),
        "ra_W3": s * jax.random.normal(keys[12], (RH, RH), jnp.float32),
        "ra_b3": s * jax.random.normal(keys[13], (1, RH), jnp.float32),
        "ra_W4": s * jax.random.normal(keys[14], (RH, 1), jnp.float32),
        "ra_b4": s * jax.random.normal(keys[15], (1, 1), jnp.float32),
        "W_lin2": s * jax.random.normal(keys[16], (C, C), jnp.float32),
        "W_sc": s * jax.random.normal(keys[17], (A, C, C), jnp.float32),
    }

    out = attention_interaction_block(x, h, edge_length_embeddings, edge_sh,
                                      edge_index, r_ijs, params)
    out = jax.block_until_ready(out)

    ref = _reference(x, h, edge_length_embeddings, edge_sh, edge_index, r_ijs, params)
    ref = jax.block_until_ready(ref)

    # Tolerance sized for TPU matmul precision: the kernel's per-edge MXU dots run
    # in bf16 (exact 0/1 one-hots; bf16-rounded operands on a sub-dominant term),
    # while the reference is pinned to HIGHEST precision f32.
    np.testing.assert_allclose(np.asarray(out), np.asarray(ref), rtol=2e-2, atol=2e-3)

    print("KERNEL_OK")
</pallas_src>

<mosaic_0001>
module attributes {stable_mosaic.version = 11 : i64} {
  func.func @_interaction_kernel(%arg0: i32, %arg1: memref<16x64xf32, #tpu.memory_space<vmem>>, %arg2: memref<16x16xf32, #tpu.memory_space<vmem>>, %arg3: memref<256x8xf32, #tpu.memory_space<vmem>>, %arg4: memref<1x256xf32, #tpu.memory_space<vmem>>, %arg5: memref<1x256xf32, #tpu.memory_space<vmem>>, %arg6: memref<256x1xi32, #tpu.memory_space<vmem>>, %arg7: memref<1x256xi32, #tpu.memory_space<vmem>>, %arg8: memref<16x128xf32, #tpu.memory_space<vmem>>, %arg9: memref<8x8xf32, #tpu.memory_space<vmem>>, %arg10: memref<8x128xf32, #tpu.memory_space<vmem>>, %arg11: memref<8x1xf32, #tpu.memory_space<vmem>>, %arg12: memref<8x8xf32, #tpu.memory_space<vmem>>, %arg13: memref<8x1xf32, #tpu.memory_space<vmem>>, %arg14: memref<8x8xf32, #tpu.memory_space<vmem>>, %arg15: memref<8x1xf32, #tpu.memory_space<vmem>>, %arg16: memref<8x8xf32, #tpu.memory_space<vmem>>, %arg17: memref<8x1xf32, #tpu.memory_space<vmem>>, %arg18: memref<8x1xf32, #tpu.memory_space<vmem>>, %arg19: memref<1x1xf32, #tpu.memory_space<vmem>>, %arg20: memref<128x128xf32, #tpu.memory_space<vmem>>, %arg21: memref<64x128xf32, #tpu.memory_space<vmem>>, %arg22: memref<16x128xf32, #tpu.memory_space<vmem>>, %arg23: memref<16x128xbf16, #tpu.memory_space<vmem>>, %arg24: memref<16x128xf32, #tpu.memory_space<vmem>>) attributes {dimension_semantics = [#tpu.dimension_semantics<arbitrary>], iteration_bounds = array<i64: 1>, scalar_prefetch = 0 : i64, scratch_operands = 2 : i64, tpu.core_type = #tpu.core_type<tc>, window_params = [{pipeline_mode = #tpu.pipeline_mode<synchronous>, transform_indices = @transform_0, window_bounds = array<i64: 16, 64>}, {pipeline_mode = #tpu.pipeline_mode<synchronous>, transform_indices = @transform_1, window_bounds = array<i64: 16, 16>}, {transform_indices = @transform_2, window_bounds = array<i64: 256, 8>}, {transform_indices = @transform_3, window_bounds = array<i64: 1, 256>}, {transform_indices = @transform_4, window_bounds = array<i64: 1, 256>}, {transform_indices = @transform_5, window_bounds = array<i64: 256, 1>}, {transform_indices = @transform_6, window_bounds = array<i64: 1, 256>}, {pipeline_mode = #tpu.pipeline_mode<synchronous>, transform_indices = @transform_7, window_bounds = array<i64: 16, 128>}, {pipeline_mode = #tpu.pipeline_mode<synchronous>, transform_indices = @transform_8, window_bounds = array<i64: 8, 8>}, {pipeline_mode = #tpu.pipeline_mode<synchronous>, transform_indices = @transform_9, window_bounds = array<i64: 8, 128>}, {pipeline_mode = #tpu.pipeline_mode<synchronous>, transform_indices = @transform_10, window_bounds = array<i64: 8, 1>}, {pipeline_mode = #tpu.pipeline_mode<synchronous>, transform_indices = @transform_11, window_bounds = array<i64: 8, 8>}, {pipeline_mode = #tpu.pipeline_mode<synchronous>, transform_indices = @transform_12, window_bounds = array<i64: 8, 1>}, {pipeline_mode = #tpu.pipeline_mode<synchronous>, transform_indices = @transform_13, window_bounds = array<i64: 8, 8>}, {pipeline_mode = #tpu.pipeline_mode<synchronous>, transform_indices = @transform_14, window_bounds = array<i64: 8, 1>}, {pipeline_mode = #tpu.pipeline_mode<synchronous>, transform_indices = @transform_15, window_bounds = array<i64: 8, 8>}, {pipeline_mode = #tpu.pipeline_mode<synchronous>, transform_indices = @transform_16, window_bounds = array<i64: 8, 1>}, {pipeline_mode = #tpu.pipeline_mode<synchronous>, transform_indices = @transform_17, window_bounds = array<i64: 8, 1>}, {pipeline_mode = #tpu.pipeline_mode<synchronous>, transform_indices = @transform_18, window_bounds = array<i64: 1, 1>}, {pipeline_mode = #tpu.pipeline_mode<synchronous>, transform_indices = @transform_19, window_bounds = array<i64: 128, 128>}, {pipeline_mode = #tpu.pipeline_mode<synchronous>, transform_indices = @transform_20, window_bounds = array<i64: 64, 128>}, {pipeline_mode = #tpu.pipeline_mode<synchronous>, transform_indices = @transform_21, window_bounds = array<i64: 16, 128>}]} {
    %c0_i32 = arith.constant 0 : i32
    %0 = arith.cmpi eq, %arg0, %c0_i32 : i32
    %1 = arith.extui %0 : i1 to i32
    %c0_i32_0 = arith.constant 0 : i32
    %2 = arith.cmpi ne, %1, %c0_i32_0 : i32
    scf.if %2 {
      %cst_57 = arith.constant 0.000000e+00 : f32
      %103 = vector.broadcast %cst_57 : f32 to vector<16x128xf32>
      %c0_58 = arith.constant 0 : index
      %c0_59 = arith.constant 0 : index
      %104 = vector.load %arg24[%c0_58, %c0_59] : memref<16x128xf32, #tpu.memory_space<vmem>>, vector<16x128xf32>
      tpu.vector_store %arg24[%c0_58, %c0_59], %103 {strides = array<i32>} : memref<16x128xf32, #tpu.memory_space<vmem>>, vector<16x128xf32>,
      %c0_60 = arith.constant 0 : index
      %c0_61 = arith.constant 0 : index
      %105 = vector.load %arg2[%c0_60, %c0_61] : memref<16x16xf32, #tpu.memory_space<vmem>>, vector<16x16xf32>
      %c0_62 = arith.constant 0 : index
      %c0_63 = arith.constant 0 : index
      %106 = vector.load %arg8[%c0_62, %c0_63] : memref<16x128xf32, #tpu.memory_space<vmem>>, vector<16x128xf32>
      %cst_64 = arith.constant dense<0.000000e+00> : vector<16x128xf32>
      %107 = tpu.matmul %105, %106, %cst_64 {dimension_numbers = #tpu.dot_dimension_numbers<[1], [0], [0], [1], [0, 0, 1, 1], [], []>} : vector<16x16xf32>, vector<16x128xf32>, vector<16x128xf32> -> vector<16x128xf32>
      %cst_65 = arith.constant 2.500000e-01 : f32
      %108 = vector.broadcast %cst_65 : f32 to vector<16x128xf32>
      %109 = arith.mulf %107, %108 : vector<16x128xf32>
      %110 = arith.truncf %109 : vector<16x128xf32> to vector<16x128xbf16>
      %c0_66 = arith.constant 0 : index
      %c0_67 = arith.constant 0 : index
      %111 = vector.load %arg23[%c0_66, %c0_67] : memref<16x128xbf16, #tpu.memory_space<vmem>>, vector<16x128xbf16>
      tpu.vector_store %arg23[%c0_66, %c0_67], %110 {strides = array<i32>} : memref<16x128xbf16, #tpu.memory_space<vmem>>, vector<16x128xbf16>,
    } else {
    }
    %c0 = arith.constant 0 : index
    %c0_1 = arith.constant 0 : index
    %3 = vector.load %arg3[%c0, %c0_1] : memref<256x8xf32, #tpu.memory_space<vmem>>, vector<256x8xf32>
    %c0_2 = arith.constant 0 : index
    %c0_3 = arith.constant 0 : index
    %4 = vector.load %arg9[%c0_2, %c0_3] : memref<8x8xf32, #tpu.memory_space<vmem>>, vector<8x8xf32>
    %cst = arith.constant dense<0.000000e+00> : vector<256x8xf32>
    %5 = tpu.matmul %3, %4, %cst {dimension_numbers = #tpu.dot_dimension_numbers<[1], [0], [0], [1], [0, 0, 1, 1], [], []>} : vector<256x8xf32>, vector<8x8xf32>, vector<256x8xf32> -> vector<256x8xf32>
    %cst_4 = arith.constant 0.353553385 : f32
    %6 = vector.broadcast %cst_4 : f32 to vector<256x8xf32>
    %7 = arith.mulf %5, %6 : vector<256x8xf32>
    %cst_5 = arith.constant 0.000000e+00 : f32
    %8 = vector.broadcast %cst_5 : f32 to vector<256x8xf32>
    %9 = arith.maximumf %7, %8 : vector<256x8xf32>
    %10 = math.absf %7 : vector<256x8xf32>
    %cst_6 = arith.constant 0.000000e+00 : f32
    %11 = vector.broadcast %cst_6 : f32 to vector<256x8xf32>
    %12 = arith.subf %11, %10 : vector<256x8xf32>
    %13 = math.exp %12 : vector<256x8xf32>
    %cst_7 = arith.constant 1.000000e+00 : f32
    %14 = vector.broadcast %cst_7 : f32 to vector<256x8xf32>
    %15 = arith.addf %14, %13 : vector<256x8xf32>
    %16 = math.log %15 : vector<256x8xf32>
    %17 = arith.addf %9, %16 : vector<256x8xf32>
    %cst_8 = arith.constant 0.693147182 : f32
    %18 = vector.broadcast %cst_8 : f32 to vector<256x8xf32>
    %19 = arith.subf %17, %18 : vector<256x8xf32>
    %c0_9 = arith.constant 0 : index
    %c0_10 = arith.constant 0 : index
    %20 = vector.load %arg10[%c0_9, %c0_10] : memref<8x128xf32, #tpu.memory_space<vmem>>, vector<8x128xf32>
    %cst_11 = arith.constant dense<0.000000e+00> : vector<256x128xf32>
    %21 = tpu.matmul %19, %20, %cst_11 {dimension_numbers = #tpu.dot_dimension_numbers<[1], [0], [0], [1], [0, 0, 1, 1], [], []>} : vector<256x8xf32>, vector<8x128xf32>, vector<256x128xf32> -> vector<256x128xf32>
    %cst_12 = arith.constant 0.353553385 : f32
    %22 = vector.broadcast %cst_12 : f32 to vector<256x128xf32>
    %23 = arith.mulf %21, %22 : vector<256x128xf32>
    %24 = tpu.iota {dimensions = array<i32: 1>} : vector<256x16xi32>
    %c0_13 = arith.constant 0 : index
    %c0_14 = arith.constant 0 : index
    %25 = vector.load %arg6[%c0_13, %c0_14] : memref<256x1xi32, #tpu.memory_space<vmem>>, vector<256x1xi32>
    %26 = vector.broadcast %25 : vector<256x1xi32> to vector<256x16xi32>
    %27 = arith.cmpi eq, %24, %26 : vector<256x16xi32>
    %28 = arith.extui %27 : vector<256x16xi1> to vector<256x16xi32>
    %29 = arith.sitofp %28 : vector<256x16xi32> to vector<256x16xf32>
    %30 = arith.truncf %29 : vector<256x16xf32> to vector<256x16xbf16>
    %c0_15 = arith.constant 0 : index
    %c0_16 = arith.constant 0 : index
    %31 = vector.load %arg23[%c0_15, %c0_16] : memref<16x128xbf16, #tpu.memory_space<vmem>>, vector<16x128xbf16>
    %cst_17 = arith.constant dense<0.000000e+00> : vector<256x128xf32>
    %32 = tpu.matmul %30, %31, %cst_17 {dimension_numbers = #tpu.dot_dimension_numbers<[1], [0], [0], [1], [0, 0, 1, 1], [], []>} : vector<256x16xbf16>, vector<16x128xbf16>, vector<256x128xf32> -> vector<256x128xf32>
    %33 = arith.mulf %32, %23 : vector<256x128xf32>
    %c0_18 = arith.constant 0 : index
    %c0_19 = arith.constant 0 : index
    %34 = vector.load %arg5[%c0_18, %c0_19] : memref<1x256xf32, #tpu.memory_space<vmem>>, vector<1x256xf32>
    %35 = tpu.reciprocal %34 {approx = true} : vector<1x256xf32> -> vector<1x256xf32>
    %c0_20 = arith.constant 0 : index
    %c0_21 = arith.constant 0 : index
    %36 = vector.load %arg11[%c0_20, %c0_21] : memref<8x1xf32, #tpu.memory_space<vmem>>, vector<8x1xf32>
    %37 = vector.broadcast %36 : vector<8x1xf32> to vector<8x256xf32>
    %38 = vector.broadcast %34 : vector<1x256xf32> to vector<8x256xf32>
    %39 = arith.mulf %37, %38 : vector<8x256xf32>
    %40 = math.sin %39 : vector<8x256xf32>
    %41 = vector.broadcast %35 : vector<1x256xf32> to vector<8x256xf32>
    %42 = arith.mulf %40, %41 : vector<8x256xf32>
    %c0_22 = arith.constant 0 : index
    %c0_23 = arith.constant 0 : index
    %43 = vector.load %arg12[%c0_22, %c0_23] : memref<8x8xf32, #tpu.memory_space<vmem>>, vector<8x8xf32>
    %cst_24 = arith.constant dense<0.000000e+00> : vector<8x256xf32>
    %44 = tpu.matmul %43, %42, %cst_24 {dimension_numbers = #tpu.dot_dimension_numbers<[1], [0], [0], [1], [0, 0, 1, 1], [], []>} : vector<8x8xf32>, vector<8x256xf32>, vector<8x256xf32> -> vector<8x256xf32>
    %c0_25 = arith.constant 0 : index
    %c0_26 = arith.constant 0 : index
    %45 = vector.load %arg13[%c0_25, %c0_26] : memref<8x1xf32, #tpu.memory_space<vmem>>, vector<8x1xf32>
    %46 = vector.broadcast %45 : vector<8x1xf32> to vector<8x256xf32>
    %47 = arith.addf %44, %46 : vector<8x256xf32>
    %48 = arith.negf %47 : vector<8x256xf32>
    %49 = math.exp %48 : vector<8x256xf32>
    %cst_27 = arith.constant 1.000000e+00 : f32
    %50 = vector.broadcast %cst_27 : f32 to vector<8x256xf32>
    %51 = arith.addf %50, %49 : vector<8x256xf32>
    %52 = arith.divf %50, %51 : vector<8x256xf32>
    %53 = arith.mulf %47, %52 : vector<8x256xf32>
    %c0_28 = arith.constant 0 : index
    %c0_29 = arith.constant 0 : index
    %54 = vector.load %arg14[%c0_28, %c0_29] : memref<8x8xf32, #tpu.memory_space<vmem>>, vector<8x8xf32>
    %cst_30 = arith.constant dense<0.000000e+00> : vector<8x256xf32>
    %55 = tpu.matmul %54, %53, %cst_30 {dimension_numbers = #tpu.dot_dimension_numbers<[1], [0], [0], [1], [0, 0, 1, 1], [], []>} : vector<8x8xf32>, vector<8x256xf32>, vector<8x256xf32> -> vector<8x256xf32>
    %c0_31 = arith.constant 0 : index
    %c0_32 = arith.constant 0 : index
    %56 = vector.load %arg15[%c0_31, %c0_32] : memref<8x1xf32, #tpu.memory_space<vmem>>, vector<8x1xf32>
    %57 = vector.broadcast %56 : vector<8x1xf32> to vector<8x256xf32>
    %58 = arith.addf %55, %57 : vector<8x256xf32>
    %59 = arith.negf %58 : vector<8x256xf32>
    %60 = math.exp %59 : vector<8x256xf32>
    %cst_33 = arith.constant 1.000000e+00 : f32
    %61 = vector.broadcast %cst_33 : f32 to vector<8x256xf32>
    %62 = arith.addf %61, %60 : vector<8x256xf32>
    %63 = arith.divf %61, %62 : vector<8x256xf32>
    %64 = arith.mulf %58, %63 : vector<8x256xf32>
    %c0_34 = arith.constant 0 : index
    %c0_35 = arith.constant 0 : index
    %65 = vector.load %arg16[%c0_34, %c0_35] : memref<8x8xf32, #tpu.memory_space<vmem>>, vector<8x8xf32>
    %cst_36 = arith.constant dense<0.000000e+00> : vector<8x256xf32>
    %66 = tpu.matmul %65, %64, %cst_36 {dimension_numbers = #tpu.dot_dimension_numbers<[1], [0], [0], [1], [0, 0, 1, 1], [], []>} : vector<8x8xf32>, vector<8x256xf32>, vector<8x256xf32> -> vector<8x256xf32>
    %c0_37 = arith.constant 0 : index
    %c0_38 = arith.constant 0 : index
    %67 = vector.load %arg17[%c0_37, %c0_38] : memref<8x1xf32, #tpu.memory_space<vmem>>, vector<8x1xf32>
    %68 = vector.broadcast %67 : vector<8x1xf32> to vector<8x256xf32>
    %69 = arith.addf %66, %68 : vector<8x256xf32>
    %70 = arith.negf %69 : vector<8x256xf32>
    %71 = math.exp %70 : vector<8x256xf32>
    %cst_39 = arith.constant 1.000000e+00 : f32
    %72 = vector.broadcast %cst_39 : f32 to vector<8x256xf32>
    %73 = arith.addf %72, %71 : vector<8x256xf32>
    %74 = arith.divf %72, %73 : vector<8x256xf32>
    %75 = arith.mulf %69, %74 : vector<8x256xf32>
    %c0_40 = arith.constant 0 : index
    %c0_41 = arith.constant 0 : index
    %76 = vector.load %arg18[%c0_40, %c0_41] : memref<8x1xf32, #tpu.memory_space<vmem>>, vector<8x1xf32>
    %77 = vector.broadcast %76 : vector<8x1xf32> to vector<8x256xf32>
    %78 = arith.mulf %75, %77 : vector<8x256xf32>
    %cst_42 = arith.constant dense<0.000000e+00> : vector<256xf32>
    %79 = vector.multi_reduction <add>, %78, %cst_42 [0] : vector<8x256xf32> to vector<256xf32>
    %80 = vector.shape_cast %79 : vector<256xf32> to vector<1x256xf32>
    %c0_43 = arith.constant 0 : index
    %c0_44 = arith.constant 0 : index
    %81 = vector.load %arg19[%c0_43, %c0_44] : memref<1x1xf32, #tpu.memory_space<vmem>>, vector<1x1xf32>
    %82 = vector.broadcast %81 : vector<1x1xf32> to vector<1x256xf32>
    %83 = arith.addf %80, %82 : vector<1x256xf32>
    %c0_45 = arith.constant 0 : index
    %c0_46 = arith.constant 0 : index
    %84 = vector.load %arg4[%c0_45, %c0_46] : memref<1x256xf32, #tpu.memory_space<vmem>>, vector<1x256xf32>
    %85 = arith.mulf %83, %84 : vector<1x256xf32>
    %86 = tpu.iota {dimensions = array<i32: 0>} : vector<16x256xi32>
    %c0_47 = arith.constant 0 : index
    %c0_48 = arith.constant 0 : index
    %87 = vector.load %arg7[%c0_47, %c0_48] : memref<1x256xi32, #tpu.memory_space<vmem>>, vector<1x256xi32>
    %88 = vector.broadcast %87 : vector<1x256xi32> to vector<16x256xi32>
    %89 = arith.cmpi eq, %86, %88 : vector<16x256xi32>
    %cst_49 = arith.constant 0.000000e+00 : f32
    %90 = vector.shape_cast %85 : vector<1x256xf32> to vector<1x256xf32>
    %91 = vector.broadcast %90 : vector<1x256xf32> to vector<16x256xf32>
    %92 = vector.broadcast %cst_49 : f32 to vector<16x256xf32>
    %93 = arith.select %89, %91, %92 : vector<16x256xi1>, vector<16x256xf32>
    %94 = arith.truncf %93 : vector<16x256xf32> to vector<16x256xbf16>
    %c0_50 = arith.constant 0 : index
    %c0_51 = arith.constant 0 : index
    %95 = vector.load %arg24[%c0_50, %c0_51] : memref<16x128xf32, #tpu.memory_space<vmem>>, vector<16x128xf32>
    %96 = arith.truncf %33 : vector<256x128xf32> to vector<256x128xbf16>
    %cst_52 = arith.constant dense<0.000000e+00> : vector<16x128xf32>
    %97 = tpu.matmul %94, %96, %cst_52 {dimension_numbers = #tpu.dot_dimension_numbers<[1], [0], [0], [1], [0, 0, 1, 1], [], []>} : vector<16x256xbf16>, vector<256x128xbf16>, vector<16x128xf32> -> vector<16x128xf32>
    %98 = arith.addf %95, %97 : vector<16x128xf32>
    %c0_53 = arith.constant 0 : index
    %c0_54 = arith.constant 0 : index
    %99 = vector.load %arg24[%c0_53, %c0_54] : memref<16x128xf32, #tpu.memory_space<vmem>>, vector<16x128xf32>
    tpu.vector_store %arg24[%c0_53, %c0_54], %98 {strides = array<i32>} : memref<16x128xf32, #tpu.memory_space<vmem>>, vector<16x128xf32>,
    %c0_i32_55 = arith.constant 0 : i32
    %100 = arith.cmpi eq, %arg0, %c0_i32_55 : i32
    %101 = arith.extui %100 : i1 to i32
    %c0_i32_56 = arith.constant 0 : i32
    %102 = arith.cmpi ne, %101, %c0_i32_56 : i32
    scf.if %102 {
      %c0_57 = arith.constant 0 : index
      %c0_58 = arith.constant 0 : index
      %103 = vector.load %arg1[%c0_57, %c0_58] : memref<16x64xf32, #tpu.memory_space<vmem>>, vector<16x64xf32>
      %c0_59 = arith.constant 0 : index
      %c0_60 = arith.constant 0 : index
      %104 = vector.load %arg21[%c0_59, %c0_60] : memref<64x128xf32, #tpu.memory_space<vmem>>, vector<64x128xf32>
      %cst_61 = arith.constant dense<0.000000e+00> : vector<16x128xf32>
      %105 = tpu.matmul %103, %104, %cst_61 {dimension_numbers = #tpu.dot_dimension_numbers<[1], [0], [0], [1], [0, 0, 1, 1], [], []>} : vector<16x64xf32>, vector<64x128xf32>, vector<16x128xf32> -> vector<16x128xf32>
      %cst_62 = arith.constant 1.250000e-01 : f32
      %106 = vector.broadcast %cst_62 : f32 to vector<16x128xf32>
      %107 = arith.mulf %105, %106 : vector<16x128xf32>
      %c0_63 = arith.constant 0 : index
      %c0_64 = arith.constant 0 : index
      %108 = vector.load %arg24[%c0_63, %c0_64] : memref<16x128xf32, #tpu.memory_space<vmem>>, vector<16x128xf32>
      %c0_65 = arith.constant 0 : index
      %c0_66 = arith.constant 0 : index
      %109 = vector.load %arg20[%c0_65, %c0_66] : memref<128x128xf32, #tpu.memory_space<vmem>>, vector<128x128xf32>
      %cst_67 = arith.constant dense<0.000000e+00> : vector<16x128xf32>
      %110 = tpu.matmul %108, %109, %cst_67 {dimension_numbers = #tpu.dot_dimension_numbers<[1], [0], [0], [1], [0, 0, 1, 1], [], []>} : vector<16x128xf32>, vector<128x128xf32>, vector<16x128xf32> -> vector<16x128xf32>
      %cst_68 = arith.constant 2.500000e-01 : f32
      %111 = vector.broadcast %cst_68 : f32 to vector<16x128xf32>
      %112 = arith.mulf %110, %111 : vector<16x128xf32>
      %113 = arith.addf %112, %107 : vector<16x128xf32>
      %c0_69 = arith.constant 0 : index
      %c0_70 = arith.constant 0 : index
      %114 = vector.load %arg22[%c0_69, %c0_70] : memref<16x128xf32, #tpu.memory_space<vmem>>, vector<16x128xf32>
      tpu.vector_store %arg22[%c0_69, %c0_70], %113 {strides = array<i32>} : memref<16x128xf32, #tpu.memory_space<vmem>>, vector<16x128xf32>,
    } else {
    }
    return
  }
  func.func @transform_0(%arg0: i32) -> (i32, i32) {
    %c0_i32 = arith.constant 0 : i32
    %c0_i32_0 = arith.constant 0 : i32
    %c0_i32_1 = arith.constant 0 : i32
    return %c0_i32, %c0_i32_0 : i32, i32
  }
  func.func @transform_1(%arg0: i32) -> (i32, i32) {
    %c0_i32 = arith.constant 0 : i32
    %c0_i32_0 = arith.constant 0 : i32
    %c0_i32_1 = arith.constant 0 : i32
    return %c0_i32, %c0_i32_0 : i32, i32
  }
  func.func @transform_2(%arg0: i32) -> (i32, i32) {
    %c0_i32 = arith.constant 0 : i32
    %c0_i32_0 = arith.constant 0 : i32
    return %arg0, %c0_i32 : i32, i32
  }
  func.func @transform_3(%arg0: i32) -> (i32, i32) {
    %c0_i32 = arith.constant 0 : i32
    %c0_i32_0 = arith.constant 0 : i32
    return %c0_i32, %arg0 : i32, i32
  }
  func.func @transform_4(%arg0: i32) -> (i32, i32) {
    %c0_i32 = arith.constant 0 : i32
    %c0_i32_0 = arith.constant 0 : i32
    return %c0_i32, %arg0 : i32, i32
  }
  func.func @transform_5(%arg0: i32) -> (i32, i32) {
    %c0_i32 = arith.constant 0 : i32
    %c0_i32_0 = arith.constant 0 : i32
    return %arg0, %c0_i32 : i32, i32
  }
  func.func @transform_6(%arg0: i32) -> (i32, i32) {
    %c0_i32 = arith.constant 0 : i32
    %c0_i32_0 = arith.constant 0 : i32
    return %c0_i32, %arg0 : i32, i32
  }
  func.func @transform_7(%arg0: i32) -> (i32, i32) {
    %c0_i32 = arith.constant 0 : i32
    %c0_i32_0 = arith.constant 0 : i32
    %c0_i32_1 = arith.constant 0 : i32
    return %c0_i32, %c0_i32_0 : i32, i32
  }
  func.func @transform_8(%arg0: i32) -> (i32, i32) {
    %c0_i32 = arith.constant 0 : i32
    %c0_i32_0 = arith.constant 0 : i32
    %c0_i32_1 = arith.constant 0 : i32
    return %c0_i32, %c0_i32_0 : i32, i32
  }
  func.func @transform_9(%arg0: i32) -> (i32, i32) {
    %c0_i32 = arith.constant 0 : i32
    %c0_i32_0 = arith.constant 0 : i32
    %c0_i32_1 = arith.constant 0 : i32
    return %c0_i32, %c0_i32_0 : i32, i32
  }
  func.func @transform_10(%arg0: i32) -> (i32, i32) {
    %c0_i32 = arith.constant 0 : i32
    %c0_i32_0 = arith.constant 0 : i32
    %c0_i32_1 = arith.constant 0 : i32
    return %c0_i32, %c0_i32_0 : i32, i32
  }
  func.func @transform_11(%arg0: i32) -> (i32, i32) {
    %c0_i32 = arith.constant 0 : i32
    %c0_i32_0 = arith.constant 0 : i32
    %c0_i32_1 = arith.constant 0 : i32
    return %c0_i32, %c0_i32_0 : i32, i32
  }
  func.func @transform_12(%arg0: i32) -> (i32, i32) {
    %c0_i32 = arith.constant 0 : i32
    %c0_i32_0 = arith.constant 0 : i32
    %c0_i32_1 = arith.constant 0 : i32
    return %c0_i32, %c0_i32_0 : i32, i32
  }
  func.func @transform_13(%arg0: i32) -> (i32, i32) {
    %c0_i32 = arith.constant 0 : i32
    %c0_i32_0 = arith.constant 0 : i32
    %c0_i32_1 = arith.constant 0 : i32
    return %c0_i32, %c0_i32_0 : i32, i32
  }
  func.func @transform_14(%arg0: i32) -> (i32, i32) {
    %c0_i32 = arith.constant 0 : i32
    %c0_i32_0 = arith.constant 0 : i32
    %c0_i32_1 = arith.constant 0 : i32
    return %c0_i32, %c0_i32_0 : i32, i32
  }
  func.func @transform_15(%arg0: i32) -> (i32, i32) {
    %c0_i32 = arith.constant 0 : i32
    %c0_i32_0 = arith.constant 0 : i32
    %c0_i32_1 = arith.constant 0 : i32
    return %c0_i32, %c0_i32_0 : i32, i32
  }
  func.func @transform_16(%arg0: i32) -> (i32, i32) {
    %c0_i32 = arith.constant 0 : i32
    %c0_i32_0 = arith.constant 0 : i32
    %c0_i32_1 = arith.constant 0 : i32
    return %c0_i32, %c0_i32_0 : i32, i32
  }
  func.func @transform_17(%arg0: i32) -> (i32, i32) {
    %c0_i32 = arith.constant 0 : i32
    %c0_i32_0 = arith.constant 0 : i32
    %c0_i32_1 = arith.constant 0 : i32
    return %c0_i32, %c0_i32_0 : i32, i32
  }
  func.func @transform_18(%arg0: i32) -> (i32, i32) {
    %c0_i32 = arith.constant 0 : i32
    %c0_i32_0 = arith.constant 0 : i32
    %c0_i32_1 = arith.constant 0 : i32
    return %c0_i32, %c0_i32_0 : i32, i32
  }
  func.func @transform_19(%arg0: i32) -> (i32, i32) {
    %c0_i32 = arith.constant 0 : i32
    %c0_i32_0 = arith.constant 0 : i32
    %c0_i32_1 = arith.constant 0 : i32
    return %c0_i32, %c0_i32_0 : i32, i32
  }
  func.func @transform_20(%arg0: i32) -> (i32, i32) {
    %c0_i32 = arith.constant 0 : i32
    %c0_i32_0 = arith.constant 0 : i32
    %c0_i32_1 = arith.constant 0 : i32
    return %c0_i32, %c0_i32_0 : i32, i32
  }
  func.func @transform_21(%arg0: i32) -> (i32, i32) {
    %c0_i32 = arith.constant 0 : i32
    %c0_i32_0 = arith.constant 0 : i32
    %c0_i32_1 = arith.constant 0 : i32
    return %c0_i32, %c0_i32_0 : i32, i32
  }
}

</mosaic_0001>

<bundles_post_ra>
// kernel: tpu_custom_call.1
= control target key start
LH: loop header
LB: loop body
LE: loop exit
PB: predicated region body
PF: predicated region fallthrough
CT: control target
= control target key end

     0   :  { %s3745_s0 = inlined_call_operand.vmem [shape: f32[16,64], index: 0, kind: input, shape index: {}]   ;;  %s3746_s1 = inlined_call_operand.vmem [shape: f32[16,16], index: 1, kind: input, shape index: {}]   ;;  %s3747_s2 = inlined_call_operand.vmem [shape: f32[256,8], index: 2, kind: input, shape index: {}]   ;;  %s3748_s3 = inlined_call_operand.vmem [shape: f32[1,256], index: 3, kind: input, shape index: {}]   ;;  %s3749_s4 = inlined_call_operand.vmem [shape: f32[1,256], index: 4, kind: input, shape index: {}]   ;;  %s3750_s5 = inlined_call_operand.vmem [shape: s32[256,1], index: 5, kind: input, shape index: {}]   ;;  %s3751_s6 = inlined_call_operand.vmem [shape: s32[1,256], index: 6, kind: input, shape index: {}]   ;;  %s3752_s7 = inlined_call_operand.vmem [shape: f32[16,128], index: 7, kind: input, shape index: {}]   ;;  %s3753_s8 = inlined_call_operand.vmem [shape: f32[8,8], index: 8, kind: input, shape index: {}]   ;;  %s3754_s9 = inlined_call_operand.vmem [shape: f32[8,128], index: 9, kind: input, shape index: {}]   ;;  %s3755_s10 = inlined_call_operand.vmem [shape: f32[8,1], index: 10, kind: input, shape index: {}]   ;;  %s3756_s11 = inlined_call_operand.vmem [shape: f32[8,8], index: 11, kind: input, shape index: {}]   ;;  %s3757_s12 = inlined_call_operand.vmem [shape: f32[8,1], index: 12, kind: input, shape index: {}]   ;;  %s3758_s13 = inlined_call_operand.vmem [shape: f32[8,8], index: 13, kind: input, shape index: {}]   ;;  %s3759_s14 = inlined_call_operand.vmem [shape: f32[8,1], index: 14, kind: input, shape index: {}]   ;;  %s3760_s15 = inlined_call_operand.vmem [shape: f32[8,8], index: 15, kind: input, shape index: {}]   ;;  %s3761_s16 = inlined_call_operand.vmem [shape: f32[8,1], index: 16, kind: input, shape index: {}]   ;;  %s3762_s17 = inlined_call_operand.vmem [shape: f32[8,1], index: 17, kind: input, shape index: {}]   ;;  %s3763_s18 = inlined_call_operand.<no memory space> [shape: f32[1,1], index: 18, kind: input, shape index: {}]   ;;  %s3764_s19 = inlined_call_operand.vmem [shape: f32[128,128], index: 19, kind: input, shape index: {}]   ;;  %s3765_s20 = inlined_call_operand.vmem [shape: f32[64,128], index: 20, kind: input, shape index: {}]   ;;  %s3766_s21 = inlined_call_operand.hbm [shape: f32[16,128], index: 21, kind: output, shape index: {}]  }
   0x1   :  { %3772 = sst [smem:[#allocation8_spill]] %s3745_s0  ;;  %v26_v0 = vstv %s3763_s18 }
   0x2   :  { %3773 = sst [smem:[#allocation9_spill]] %s3746_s1  ;;  %27 = vst [vmem:[#allocation4] sm:$0x1] %v26_v0 }
   0x3   :  { %3774 = sst [smem:[#allocation10_spill]] %s3747_s2 }
   0x4   :  { %3775 = sst [smem:[#allocation11_spill]] %s3748_s3 }
   0x5   :  { %3776 = sst [smem:[#allocation12_spill]] %s3749_s4 }
   0x6   :  { %3777 = sst [smem:[#allocation13_spill]] %s3750_s5 }
   0x7   :  { %v81_v1 = vld [vmem:[%s3752_s7 + $0x8] sm:$0xff]  ;;  %v150_v2 = vld [vmem:[%s3753_s8] sm:$0xff]  ;;  %v2571_v4 = vmov 0   ;;  %s3778_s30 = sld [smem:[#allocation13_spill]]  ;;  %vm151_vm0 = vcmask 64512   ;;  %vm82_vm1 = vcmask 130048  }
   0x8   :  { %v1377_v3 = vld [vmem:[%s3755_s10] sm:$0xff]  ;;  %2389 = vset.pattern.permute.xlu1 %v2571_v4  ;;  %2388 = vset.pattern.permute.xlu0 %v2571_v4  ;;  %s3779_s23 = sld [smem:[#allocation10_spill]] }
   0x9   :  { %v80_v7 = vld [vmem:[%s3752_s7] sm:$0xff]  ;;  %103 = vmatpush.msra.mxu0 %v81_v1  ;;  %2374 = vmatpush.msra.mxu1 %v150_v2  ;;  %s3780_s2 = sld [smem:[#allocation9_spill]] }
   0xa   :  { %1380 = vperm.xlu0 %2388, %v1377_v3   ;;  %2390 = vset.pattern.permute.xlu2 %v2571_v4 }
   0xb   :  { %104 = vmatpush.msra.mxu0 %v80_v7 }
   0xd   :  { %v958_v5 = vld [vmem:[%s3778_s30 + $0x8] sm:$0xff]  ;;  %263 = vmatpush.msrb.mxu0 %v150_v2  ;;  %v960_v9 = vld [vmem:[%s3778_s30 + $0x18] sm:$0xff]  ;;  %v959_v10 = vld [vmem:[%s3778_s30 + $0x10] sm:$0xff] }
   0xe   :  { %v120_v6 = vld [vmem:[%s3779_s23 + $0x10] sm:$0xff]  ;;  %993 = vperm.xlu1 %2389, %v958_v5   ;;  %999 = vperm.xlu2 %2390, %v960_v9   ;;  %v957_v11 = vld [vmem:[%s3778_s30] sm:$0xff] }
   0xf   :  { %v78_v8 = vld [vmem:[%s3780_s2] sm:$0xff]  ;;  %2196 = vmatmul.msk.f32.vlgmr.msra.gmra.mxu1 %vm151_vm0, %v120_v6 }
  0x10   :  { %2192 = vmatmul.msk.f32.vlgmr.msra.gmra.mxu0 %vm82_vm1, %v78_v8 }
  0x11   :  { %28 = vsyncpa [#allocation6], 0  ;;  %v121_v12 = vld [vmem:[%s3779_s23 + $0x18] sm:$0xff]  ;;  %v79_v13 = vld [vmem:[%s3780_s2 + $0x8] sm:$0xff]  ;;  %s3781_s18 = sld [smem:[#allocation12_spill]]  ;;  %s2180_s0 = sshll.u32 %s3766_s21, 4  ;;  %s2181_s0 = int_to_ptr.hbm [resolvable:$true] %s2180_s0 }
  0x12   :  { %990 = vperm.xlu0 %2388, %v957_v11   ;;  %v1708_v14 = vld [vmem:[%s3757_s12] sm:$0xff]  ;;  %v962_v15 = vld [vmem:[%s3778_s30 + $0x28] sm:$0xff]  ;;  %v963_v19 = vld [vmem:[%s3778_s30 + $0x30] sm:$0xff]  ;;  %s3788_s22 = sld [smem:[#allocation8_spill]] }
  0x13   :  { %v961_v16 = vld [vmem:[%s3778_s30 + $0x20] sm:$0xff]  ;;  %v964_v21 = vld [vmem:[%s3778_s30 + $0x38] sm:$0xff]  ;;  %v123_v22 = vld [vmem:[%s3779_s23 + $0x28] sm:$0xff] }
  0x14   :  { %v122_v17 = vld [vmem:[%s3779_s23 + $0x20] sm:$0xff]  ;;  %v119_v23 = vld [vmem:[%s3779_s23 + $0x8] sm:$0xff]  ;;  %v968_v25 = vld [vmem:[%s3778_s30 + $0x58] sm:$0xff] }
  0x15   :  { %v118_v18 = vld [vmem:[%s3779_s23] sm:$0xff]  ;;  %v966_v24 = vld [vmem:[%s3778_s30 + $0x48] sm:$0xff]  ;;  %v967_v26 = vld [vmem:[%s3778_s30 + $0x50] sm:$0xff] }
  0x16   :  { %996 = vperm.xlu1 %2389, %v959_v10   ;;  %1711 = vperm.xlu2 %2390, %v1708_v14   ;;  %v965_v20 = vld [vmem:[%s3778_s30 + $0x40] sm:$0xff]  ;;  %v124_v27 = vld [vmem:[%s3779_s23 + $0x30] sm:$0xff]  ;;  %v970_v30 = vld [vmem:[%s3778_s30 + $0x68] sm:$0xff] }
  0x17   :  { %2197 = vmatmul.msk.f32.gmra.mxu1 %vm151_vm0, %v121_v12  ;;  %v969_v28 = vld [vmem:[%s3778_s30 + $0x60] sm:$0xff]  ;;  %v971_v29 = vld [vmem:[%s3778_s30 + $0x70] sm:$0xff]  ;;  %v125_v31 = vld [vmem:[%s3779_s23 + $0x38] sm:$0xff] }
  0x18   :  { %2193 = vmatmul.msk.f32.gmra.mxu0 %vm82_vm1, %v79_v13  ;;  %v972_v32 = vld [vmem:[%s3778_s30 + $0x78] sm:$0xff]  ;;  %v974_v33 = vld [vmem:[%s3778_s30 + $0x88] sm:$0xff]  ;;  %v973_v34 = vld [vmem:[%s3778_s30 + $0x80] sm:$0xff] }
  0x19   :  { %v126_v35 = vld [vmem:[%s3779_s23 + $0x40] sm:$0xff]  ;;  %v975_v36 = vld [vmem:[%s3778_s30 + $0x90] sm:$0xff]  ;;  %v976_v38 = vld [vmem:[%s3778_s30 + $0x98] sm:$0xff] }
  0x1a   :  { %1002 = vperm.xlu0 %2388, %v961_v16   ;;  %v977_v37 = vld [vmem:[%s3778_s30 + $0xa0] sm:$0xff]  ;;  %v127_v39 = vld [vmem:[%s3779_s23 + $0x48] sm:$0xff]  ;;  %v980_v41 = vld [vmem:[%s3778_s30 + $0xb8] sm:$0xff] }
  0x1b   :  { %v978_v40 = vld [vmem:[%s3778_s30 + $0xa8] sm:$0xff]  ;;  %v979_v42 = vld [vmem:[%s3778_s30 + $0xb0] sm:$0xff]  ;;  %v1798_v44 = vld [vmem:[%s3759_s14] sm:$0xff]  ;;  %s2580_s14 = smov 128  }
  0x1c   :  { %v128_v43 = vld [vmem:[%s3779_s23 + $0x50] sm:$0xff]  ;;  %v982_v45 = vld [vmem:[%s3778_s30 + $0xc8] sm:$0xff]  ;;  %v981_v46 = vld [vmem:[%s3778_s30 + $0xc0] sm:$0xff] }
  0x1d   :  { %v129_v47 = vld [vmem:[%s3779_s23 + $0x58] sm:$0xff]  ;;  %v983_v48 = vld [vmem:[%s3778_s30 + $0xd0] sm:$0xff]  ;;  %v985_v49 = vld [vmem:[%s3778_s30 + $0xe0] sm:$0xff] }
  0x1e   :  { %1005 = vperm.xlu1 %2389, %v962_v15   ;;  %1008 = vperm.xlu2 %2390, %v963_v19   ;;  %v984_v50 = vld [vmem:[%s3778_s30 + $0xd8] sm:$0xff]  ;;  %v130_v51 = vld [vmem:[%s3779_s23 + $0x60] sm:$0xff]  ;;  %v986_v52 = vld [vmem:[%s3778_s30 + $0xe8] sm:$0xff] }
  0x1f   :  { %2198 = vmatmul.msk.f32.gmra.mxu1 %vm151_vm0, %v122_v17  ;;  %v988_v53 = vld [vmem:[%s3778_s30 + $0xf8] sm:$0xff]  ;;  %v987_v54 = vld [vmem:[%s3778_s30 + $0xf0] sm:$0xff]  ;;  %v131_v55 = vld [vmem:[%s3779_s23 + $0x68] sm:$0xff]  ;;  %s3786_s30 = sld [smem:[#allocation11_spill]] }
  0x20   :  { %2194 = vmatmul.msk.f32.vlgmr.msrb.gmra.mxu0 %vm151_vm0, %v118_v18  ;;  %v1997_v56 = vld [vmem:[#allocation4] sm:$0x1]  ;;  %v1977_v57 = vld [vmem:[%s3762_s17] sm:$0xff]  ;;  %v132_v58 = vld [vmem:[%s3779_s23 + $0x70] sm:$0xff] }
  0x21   :  { %v133_v59 = vld [vmem:[%s3779_s23 + $0x78] sm:$0xff]  ;;  %v2890_v60 = vld [vmem:[%s3781_s18] sm:$0x3]  ;;  %v135_v8 = vld [vmem:[%s3779_s23 + $0x88] sm:$0xff] }
  0x22   :  { %1011 = vperm.xlu0 %2388, %v964_v21   ;;  %v134_v61 = vld [vmem:[%s3779_s23 + $0x80] sm:$0xff]  ;;  %v1384_v62 = vperm.slane %v2890_v60, 0  ;;  %v1385_v63 = vperm.slane %v2890_v60, 1 }
  0x26   :  { %1014 = vperm.xlu1 %2389, %v965_v20   ;;  %1017 = vperm.xlu2 %2390, %v966_v24  }
  0x27   :  { %2199 = vmatmul.msk.f32.gmra.mxu1 %vm151_vm0, %v123_v22 }
  0x28   :  { %2195 = vmatmul.msk.f32.gmra.mxu0 %vm151_vm0, %v119_v23 }
  0x2a   :  { %1020 = vperm.xlu0 %2388, %v967_v26  }
  0x2e   :  { %1023 = vperm.xlu1 %2389, %v968_v25   ;;  %1026 = vperm.xlu2 %2390, %v969_v28   ;;  %v2572_v28 = vmov 683565275  }
  0x2f   :  { %2200 = vmatmul.msk.f32.gmra.mxu1 %vm151_vm0, %v124_v27 }
  0x32   :  { %1029 = vperm.xlu0 %2388, %v970_v30   ;;  %v2573_v30 = vmov 2475754826  }
  0x36   :  { %1032 = vperm.xlu1 %2389, %v971_v29   ;;  %1035 = vperm.xlu2 %2390, %v972_v32  }
  0x37   :  { %2201 = vmatmul.msk.f32.gmra.mxu1 %vm151_vm0, %v125_v31 }
  0x3a   :  { %1038 = vperm.xlu0 %2388, %v973_v34   ;;  %v2574_v34 = vmov 2131351028  }
  0x3e   :  { %1041 = vperm.xlu1 %2389, %v974_v33   ;;  %1044 = vperm.xlu2 %2390, %v975_v36  }
  0x3f   :  { %2202 = vmatmul.msk.f32.gmra.mxu1 %vm151_vm0, %v126_v35 }
  0x42   :  { %1047 = vperm.xlu0 %2388, %v976_v38  }
  0x46   :  { %1050 = vperm.xlu1 %2389, %v977_v37   ;;  %1053 = vperm.xlu2 %2390, %v978_v40   ;;  %v2575_v37 = vmov 2102212464   ;;  %v2576_v40 = vmov 920167782  }
  0x47   :  { %2203 = vmatmul.msk.f32.gmra.mxu1 %vm151_vm0, %v127_v39 }
  0x4a   :  { %1056 = vperm.xlu0 %2388, %v979_v42  }
  0x4e   :  { %1059 = vperm.xlu1 %2389, %v980_v41   ;;  %1801 = vperm.xlu2 %2390, %v1798_v44  }
  0x4f   :  { %2204 = vmatmul.msk.f32.gmra.mxu1 %vm151_vm0, %v128_v43  ;;  %v2577_v43 = vmov 1326507024  }
  0x52   :  { %1062 = vperm.xlu0 %2388, %v981_v46  }
  0x56   :  { %1065 = vperm.xlu1 %2389, %v982_v45   ;;  %1068 = vperm.xlu2 %2390, %v983_v48  }
  0x57   :  { %2205 = vmatmul.msk.f32.gmra.mxu1 %vm151_vm0, %v129_v47 }
  0x5a   :  { %1071 = vperm.xlu0 %2388, %v984_v50  }
  0x5e   :  { %1074 = vperm.xlu1 %2389, %v985_v49   ;;  %1077 = vperm.xlu2 %2390, %v986_v52  }
  0x5f   :  { %2206 = vmatmul.msk.f32.gmra.mxu1 %vm151_vm0, %v130_v51 }
  0x62   :  { %1080 = vperm.xlu0 %2388, %v987_v54  }
  0x66   :  { %1083 = vperm.xlu1 %2389, %v988_v53  }
  0x67   :  { %2207 = vmatmul.msk.f32.gmra.mxu1 %vm151_vm0, %v131_v55  ;;  %v136_v55 = vld [vmem:[%s3779_s23 + $0x90] sm:$0xff] }
  0x6a   :  { %1980 = vperm.xlu0 %2388, %v1977_v57  }
  0x6e   :  { %2000 = vperm.xlu1 %2389, %v1997_v56  }
  0x6f   :  { %2208 = vmatmul.msk.f32.gmra.mxu1 %vm151_vm0, %v132_v58 }
  0x77   :  { %2209 = vmatmul.msk.f32.gmra.mxu1 %vm151_vm0, %v133_v59 }
  0x7c   :  { %v1381_v0 = vpop.permute.xlu0 %1380 }
  0x7d   :  { %v2898_v1 = vmul.f32 %v1384_v62, %v1381_v0  ;;  %v2900_v2 = vmul.f32 %v1385_v63, %v1381_v0 }
  0x7f   :  { %2210 = vmatmul.msk.f32.gmra.mxu1 %vm151_vm0, %v134_v61  ;;  %v1390_v3 = vand.u32 2147483647, %v2898_v1  ;;  %v1393_v5 = vand.u32 2139095040, %v2898_v1  ;;  %v1545_v6 = vand.u32 2147483647, %v2900_v2  ;;  %v1548_v7 = vand.u32 2139095040, %v2900_v2 }
  0x81   :  { %v1394_v9 = vshrl.u32 %v1393_v5, 23  ;;  %v1397_v10 = vand.u32 8388607, %v1390_v3  ;;  %v1549_v11 = vshrl.u32 %v1548_v7, 23  ;;  %v1552_v14 = vand.u32 8388607, %v1545_v6 }
  0x83   :  { %v2342_v12 = vadd.s32 4294967169, %v1394_v9  ;;  %v1398_v13 = vor.u32 8388608, %v1397_v10  ;;  %v2345_v15 = vadd.s32 4294967169, %v1549_v11  ;;  %v1553_v19 = vor.u32 8388608, %v1552_v14 }
  0x85   :  { %v1400_v16 = vadd.s32 1, %v2342_v12  ;;  %v1555_v17 = vadd.s32 1, %v2345_v15  ;;  %v2914_v18 = vshll.u32 %v1398_v13, 8  ;;  %v2921_v26 = vshll.u32 %v1553_v19, 8 }
  0x87   :  { %2211 = vmatmul.msk.f32.gmra.mxu1 %vm151_vm0, %v135_v8  ;;  %vm1401_vm2 = vcmp.gt.s32.totalorder %v1400_v16, 0  ;;  %vm1556_vm3 = vcmp.gt.s32.totalorder %v1555_v17, 0  ;;  %v2917_v24 = vand.u32 65535, %v2914_v18  ;;  %v1440_v32 = vshrl.u32 %v2914_v18, 16 }
  0x88   :  { %v1402_v20 = vsel %vm1401_vm2, %v1400_v16, 0  ;;  %v1557_v22 = vsel %vm1556_vm3, %v1555_v17, 0 }
  0x89   :  { %v1404_v21 = vand.u32 31, %v1402_v20  ;;  %v2919_v25 = vand.u32 31, %v1557_v22  ;;  %v2923_v27 = vshrl.u32 %v1402_v20, 5  ;;  %v2967_v15 = vshrl.u32 %v1557_v22, 5 }
  0x8b   :  { %v1405_v23 = vsub.s32 32, %v1404_v21  ;;  %v1407_v29 = vshll.u32 %v2572_v28, %v1404_v21  ;;  %v1410_v31 = vshll.u32 %v2573_v30, %v1404_v21  ;;  %v1413_v36 = vshll.u32 %v2574_v34, %v1404_v21 }
  0x8c   :  { %v1416_v39 = vshll.u32 %v2575_v37, %v1404_v21  ;;  %v1419_v42 = vshll.u32 %v2576_v40, %v1404_v21  ;;  %v2933_v48 = vsub.s32 32, %v2919_v25  ;;  %vm1422_vm4 = vcmp.lt.s32.totalorder %v2923_v27, 1  ;;  %v2937_v51 = vpop.f32.mrf.mxu1 }
  0x8d   :  { %v1408_v33 = vshrl.u32 %v2573_v30, %v1405_v23  ;;  %v1411_v35 = vshrl.u32 %v2574_v34, %v1405_v23  ;;  %v1414_v38 = vshrl.u32 %v2575_v37, %v1405_v23  ;;  %v1417_v41 = vshrl.u32 %v2576_v40, %v1405_v23 }
  0x8e   :  { %v1420_v44 = vshrl.u32 %v2577_v43, %v1405_v23  ;;  %vm1423_vm5 = vcmp.lt.s32.totalorder %v2923_v27, 2  ;;  %v1406_v52 = vshrl.u32 %v2572_v28, %v1405_v23  ;;  %vm1425_vm6 = vcmp.lt.s32.totalorder %v2923_v27, 4 }
  0x8f   :  { %v1409_v45 = vor.u32 %v1408_v33, %v1407_v29  ;;  %v1412_v46 = vor.u32 %v1411_v35, %v1410_v31  ;;  %v1415_v47 = vor.u32 %v1414_v38, %v1413_v36  ;;  %v1418_v49 = vor.u32 %v1417_v41, %v1416_v39  ;;  %2212 = vmatmul.msk.f32.gmra.mxu1 %vm151_vm0, %v136_v55  ;;  %v137_v38 = vld [vmem:[%s3779_s23 + $0x98] sm:$0xff] }
  0x90   :  { %v1421_v50 = vor.u32 %v1420_v44, %v1419_v42  ;;  %vm1424_vm7 = vcmp.lt.s32.totalorder %v2923_v27, 3  ;;  %v1562_v58 = vshll.u32 %v2572_v28, %v2919_v25  ;;  %v1563_v63 = vshrl.u32 %v2573_v30, %v2933_v48 }
  0x91   :  { %v1430_v53 = vsel %vm1422_vm4, %v1409_v45, %v1412_v46  ;;  %v1434_v54 = vsel %vm1422_vm4, %v1412_v46, %v1415_v47  ;;  %v1431_v56 = vsel %vm1425_vm6, %v1418_v49, 920167782  ;;  %v1427_v59 = vsel %vm1425_vm6, %v1415_v47, 2102212464 }
  0x92   :  { %v1435_v57 = vsel %vm1425_vm6, %v1421_v50, 1326507024  ;;  %v1432_v61 = vsel %vm1424_vm7, %v1415_v47, %v1431_v56  ;;  %v1565_v7 = vshll.u32 %v2573_v30, %v2919_v25  ;;  %v1566_v8 = vshrl.u32 %v2574_v34, %v2933_v48 }
  0x93   :  { %v1436_v62 = vsel %vm1424_vm7, %v1418_v49, %v1435_v57  ;;  %v1433_v0 = vsel %vm1423_vm5, %v1430_v53, %v1432_v61  ;;  %v1426_v13 = vsel %vm1422_vm4, %v1406_v52, %v1409_v45  ;;  %v1428_v14 = vsel %vm1424_vm7, %v1412_v46, %v1427_v59 }
  0x94   :  { %v1437_v5 = vsel %vm1423_vm5, %v1434_v54, %v1436_v62  ;;  %v1463_v11 = vand.u32 65535, %v1433_v0  ;;  %v1464_v12 = vshrl.u32 %v1433_v0, 16  ;;  %v2969_v16 = vor.u32 %v1563_v63, %v1562_v58  ;;  %v2983_v45 = vpop.f32.mrf.mxu1 }
  0x95   :  { %v1441_v9 = vand.u32 65535, %v1437_v5  ;;  %v1442_v10 = vshrl.u32 %v1437_v5, 16  ;;  %v2972_v20 = vor.u32 %v1566_v8, %v1565_v7  ;;  %v1569_v21 = vshrl.u32 %v2575_v37, %v2933_v48 }
  0x96   :  { %v1466_v29 = vmul.u32 %v1464_v12, %v2917_v24  ;;  %v1467_v30 = vmul.u32 %v1463_v11, %v1440_v32  ;;  %v1568_v31 = vshll.u32 %v2574_v34, %v2919_v25  ;;  %v1465_v35 = vmul.u32 %v1463_v11, %v2917_v24 }
  0x97   :  { %v1444_v17 = vmul.u32 %v1442_v10, %v2917_v24  ;;  %v1445_v19 = vmul.u32 %v1441_v9, %v1440_v32  ;;  %v1443_v23 = vmul.u32 %v1441_v9, %v2917_v24  ;;  %v1446_v33 = vmul.u32 %v1442_v10, %v1440_v32  ;;  %2213 = vmatmul.msk.f32.gmra.mxu1 %vm151_vm0, %v137_v38 }
  0x98   :  { %v1468_v36 = vmul.u32 %v1464_v12, %v1440_v32  ;;  %v1469_v44 = vshll.u32 %v1466_v29, 16  ;;  %v1471_v34 = vshll.u32 %v1467_v30, 16  ;;  %v1570_v47 = vor.u32 %v1569_v21, %v1568_v31 }
  0x99   :  { %v1447_v22 = vshll.u32 %v1444_v17, 16  ;;  %v1448_v39 = vshrl.u32 %v1444_v17, 16  ;;  %v1449_v41 = vshll.u32 %v1445_v19, 16  ;;  %v1450_v42 = vshrl.u32 %v1445_v19, 16 }
  0x9a   :  { %vm1473_vm9 = vc.u32 %v1465_v35, %v1469_v44  ;;  %v1475_v24 = vadd.s32 %v1469_v44, %v1465_v35  ;;  %v1572_v32 = vshrl.u32 %v2576_v40, %v2933_v48  ;;  %v1571_v53 = vshll.u32 %v2575_v37, %v2919_v25  ;;  %v713_v44 = vld [vmem:[%s3754_s9] sm:$0xff] }
  0x9b   :  { %vm1451_vm8 = vc.u32 %v1443_v23, %v1447_v22  ;;  %v1453_v46 = vadd.s32 %v1447_v22, %v1443_v23  ;;  %v1474_v52 = vsel %vm1473_vm9, 1, %v2571_v4  ;;  %v1574_v56 = vshll.u32 %v2576_v40, %v2919_v25  ;;  %v138_v25 = vld [vmem:[%s3779_s23 + $0xa0] sm:$0xff]  ;;  %v3027_v23 = vpop.f32.mrf.mxu0  ;;  %2375 = vmatpush.msra.mxu2 %v713_v44  ;;  %825 = vmatpush.msra.mxu0 %v713_v44 }
  0x9c   :  { %v1452_v49 = vsel %vm1451_vm8, 1, %v2571_v4  ;;  %v1476_v55 = vadd.s32 %v1474_v52, %v1468_v36  ;;  %vm1477_vm11 = vc.u32 %v1475_v24, %v1471_v34  ;;  %v1573_v59 = vor.u32 %v1572_v32, %v1571_v53  ;;  %v139_v53 = vld [vmem:[%s3779_s23 + $0xa8] sm:$0xff] }
  0x9d   :  { %v1454_v50 = vadd.s32 %v1452_v49, %v1446_v33  ;;  %vm1455_vm10 = vc.u32 %v1453_v46, %v1449_v41  ;;  %v1478_v58 = vsel %vm1477_vm11, 1, %v2571_v4  ;;  %v1575_v61 = vshrl.u32 %v2577_v43, %v2933_v48 }
  0x9e   :  { %v1456_v54 = vsel %vm1455_vm10, 1, %v2571_v4  ;;  %v1470_v62 = vshrl.u32 %v1466_v29, 16  ;;  %v1472_v63 = vshrl.u32 %v1467_v30, 16  ;;  %v2998_v0 = vadd.s32 %v1475_v24, %v1471_v34  ;;  %v3029_v29 = vpop.f32.mrf.mxu1 }
  0x9f   :  { %v1458_v57 = vadd.s32 %v1456_v54, %v1454_v50  ;;  %v1480_v5 = vadd.s32 %v1478_v58, %v1476_v55  ;;  %v1576_v7 = vor.u32 %v1575_v61, %v1574_v56  ;;  %vm1577_vm12 = vcmp.lt.s32.totalorder %v2967_v15, 1  ;;  %2214 = vmatmul.msk.f32.gmra.mxu1 %vm151_vm0, %v138_v25 }
  0xa0   :  { %vm1580_vm13 = vcmp.lt.s32.totalorder %v2967_v15, 4  ;;  %vm1579_vm14 = vcmp.lt.s32.totalorder %v2967_v15, 3  ;;  %v1585_v43 = vsel %vm1577_vm12, %v2969_v16, %v2972_v20  ;;  %vm1578_vm15 = vcmp.lt.s32.totalorder %v2967_v15, 2 }
  0xa1   :  { %v1459_v37 = vadd.s32 %v1458_v57, %v1448_v39  ;;  %v1481_v40 = vadd.s32 %v1480_v5, %v1470_v62  ;;  %v1586_v8 = vsel %vm1580_vm13, %v1573_v59, 920167782  ;;  %v1589_v11 = vsel %vm1577_vm12, %v2972_v20, %v1570_v47 }
  0xa2   :  { %v1587_v10 = vsel %vm1579_vm14, %v1570_v47, %v1586_v8  ;;  %v1429_v12 = vsel %vm1423_vm5, %v1426_v13, %v1428_v14  ;;  %v1590_v21 = vsel %vm1580_vm13, %v1576_v7, 1326507024  ;;  %v1594_v27 = vand.u32 65535, %v2921_v26 }
  0xa3   :  { %v3013_v9 = vadd.s32 %v1459_v37, %v1450_v42  ;;  %v1482_v17 = vadd.s32 %v1481_v40, %v1472_v63  ;;  %v1588_v19 = vsel %vm1578_vm15, %v1585_v43, %v1587_v10  ;;  %v1591_v30 = vsel %vm1579_vm14, %v1573_v59, %v1590_v21  ;;  %v109_v37 = vpop.f32.mrf.mxu0 }
  0xa4   :  { %v1618_v13 = vand.u32 65535, %v1588_v19  ;;  %v1592_v31 = vsel %vm1578_vm15, %v1589_v11, %v1591_v30  ;;  %v1595_v33 = vshrl.u32 %v2921_v26, 16  ;;  %v1619_v22 = vshrl.u32 %v1588_v19, 16 }
  0xa5   :  { %vm1485_vm2 = vc.u32 %v3013_v9, %v2998_v0  ;;  %v1486_v14 = vadd.s32 1, %v1482_v17  ;;  %v1483_v35 = vmul.u32 %v2914_v18, %v1429_v12  ;;  %v1596_v36 = vand.u32 65535, %v1592_v31 }
  0xa6   :  { %v1597_v38 = vshrl.u32 %v1592_v31, 16  ;;  %v1621_v41 = vmul.u32 %v1619_v22, %v1594_v27  ;;  %v1622_v42 = vmul.u32 %v1618_v13, %v1595_v33  ;;  %v1561_v34 = vshrl.u32 %v2572_v28, %v2933_v48  ;;  %v3058_v7 = vpop.f32.mrf.mxu1 }
  0xa7   :  { %v1487_v39 = vsel %vm1485_vm2, %v1486_v14, %v1482_v17  ;;  %v1600_v24 = vmul.u32 %v1596_v36, %v1595_v33  ;;  %v1582_v32 = vsel %vm1580_vm13, %v1570_v47, 2102212464  ;;  %v1620_v18 = vmul.u32 %v1618_v13, %v1594_v27  ;;  %2215 = vmatmul.msk.f32.gmra.mxu1 %vm151_vm0, %v139_v53 }
  0xa8   :  { %v1488_v46 = vadd.s32 %v1487_v39, %v1483_v35  ;;  %v1599_v49 = vmul.u32 %v1597_v38, %v1594_v27  ;;  %v1623_v50 = vmul.u32 %v1619_v22, %v1595_v33  ;;  %v1624_v52 = vshll.u32 %v1621_v41, 16 }
  0xa9   :  { %v1598_v55 = vmul.u32 %v1596_v36, %v1594_v27  ;;  %v1601_v56 = vmul.u32 %v1597_v38, %v1595_v33  ;;  %v1604_v28 = vshll.u32 %v1600_v24, 16  ;;  %v1626_v48 = vshll.u32 %v1622_v42, 16  ;;  %v3076_v33 = vpop.permute.xlu1 %993 }
  0xaa   :  { %v1489_v54 = vadd.s32 536870912, %v1488_v46  ;;  %v1602_v57 = vshll.u32 %v1599_v49, 16  ;;  %vm1628_vm3 = vc.u32 %v1620_v18, %v1624_v52  ;;  %v1630_v58 = vadd.s32 %v1624_v52, %v1620_v18 }
  0xab   :  { %v1629_v61 = vsel %vm1628_vm3, 1, %v2571_v4  ;;  %v3056_v5 = vmul.f32 0.35355338, %v2937_v51  ;;  %v1581_v40 = vsel %vm1577_vm12, %v1561_v34, %v2969_v16  ;;  %v1583_v8 = vsel %vm1579_vm14, %v2972_v20, %v1582_v32  ;;  %v265_v32 = vpop.f32.mrf.mxu0 }
  0xac   :  { %v3051_v59 = vshrl.u32 %v1489_v54, 30  ;;  %vm1606_vm4 = vc.u32 %v1598_v55, %v1602_v57  ;;  %v1608_v47 = vadd.s32 %v1602_v57, %v1598_v55  ;;  %v1631_v63 = vadd.s32 %v1629_v61, %v1623_v50 }
  0xad   :  { %v1607_v62 = vsel %vm1606_vm4, 1, %v2571_v4  ;;  %vm1632_vm5 = vc.u32 %v1630_v58, %v1626_v48  ;;  %v1625_v11 = vshrl.u32 %v1621_v41, 16  ;;  %v1603_v17 = vshrl.u32 %v1599_v49, 16 }
  0xae   :  { %v1491_v25 = vshll.u32 %v3051_v59, 30  ;;  %v1609_v43 = vadd.s32 %v1607_v62, %v1601_v56  ;;  %vm1610_vm6 = vc.u32 %v1608_v47, %v1604_v28  ;;  %v1633_v51 = vsel %vm1632_vm5, 1, %v2571_v4  ;;  %v3091_v18 = vpop.f32.mrf.mxu1 }
  0xaf   :  { %v1611_v10 = vsel %vm1610_vm6, 1, %v2571_v4  ;;  %v1635_v21 = vadd.s32 %v1633_v51, %v1631_v63  ;;  %v1605_v30 = vshrl.u32 %v1600_v24, 16  ;;  %v1627_v27 = vshrl.u32 %v1622_v42, 16 }
  0xb0   :  { %v3069_v12 = vsub.s32 %v1488_v46, %v1491_v25  ;;  %v1613_v19 = vadd.s32 %v1611_v10, %v1609_v43  ;;  %v427_v16 = vand.u32 2147483647, %v3056_v5  ;;  %v1584_v31 = vsel %vm1578_vm15, %v1581_v40, %v1583_v8 }
  0xb1   :  { %v1636_v20 = vadd.s32 %v1635_v21, %v1625_v11  ;;  %v3081_v36 = vadd.s32 %v1630_v58, %v1626_v48  ;;  %v3771_v41 = vlaneseq  ;;  %v3084_v42 = vmul.f32 0.35355338, %v2983_v45  ;;  %v1000_v48 = vpop.permute.xlu2 %999 }
  0xb2   :  { %vm1493_vm7 = vcmp.lt.s32.totalorder %v3069_v12, 0  ;;  %v1494_v13 = vsub.s32 0, %v3069_v12  ;;  %v1614_v14 = vadd.s32 %v1613_v19, %v1603_v17  ;;  %v459_v4 = vsub.f32 0.0, %v427_v16  ;;  %v141_v16 = vld [vmem:[%s3779_s23 + $0xb8] sm:$0xff] }
  0xb3   :  { %v1637_v38 = vadd.s32 %v1636_v20, %v1627_v27  ;;  %v112_v46 = vmul.f32 0.25, %v3027_v23  ;;  %v1638_v49 = vmul.u32 %v2921_v26, %v1584_v31  ;;  %v428_v24 = vand.u32 2147483647, %v3084_v42  ;;  %v140_v23 = vld [vmem:[%s3779_s23 + $0xb0] sm:$0xff] }
  0xb4   :  { %v1495_v22 = vsel %vm1493_vm7, %v1494_v13, %v3069_v12  ;;  %v3079_v35 = vadd.s32 %v1614_v14, %v1605_v30  ;;  %v493_v44 = vmul.f32 1.442695, %v459_v4  ;;  %v113_v52 = vmul.f32 0.25, %v109_v37  ;;  %2216 = vmatmul.msk.f32.gmra.mxu1 %vm151_vm0, %v140_v23  ;;  %v997_v37 = vpop.permute.xlu1 %996  ;;  %v3126_v14 = vpop.permute.xlu0 %990 }
  0xb5   :  { %v1496_v39 = vclz %v1495_v22  ;;  %v1641_v15 = vadd.s32 1, %v1637_v38  ;;  %v3094_v53 = vand.u32 127, %v3771_v41  ;;  %v460_v54 = vsub.f32 0.0, %v428_v24 }
  0xb6   :  { %vm1640_vm8 = vc.u32 %v3079_v35, %v3081_v36  ;;  %2391 = vpow2.f32 %v493_v44  ;;  %v2372_v26 = vpack.c.bf16 %v113_v52, %v112_v46  ;;  %v3100_v56 = vmul.f32 0.35355338, %v3029_v29  ;;  %v3113_v10 = vpop.f32.mrf.mxu1 }
  0xb7   :  { %v2343_v34 = vadd.s32 4294967294, %v1496_v39  ;;  %v1642_v50 = vsel %vm1640_vm8, %v1641_v15, %v1637_v38  ;;  %vm1088_vm10 = vcmp.eq.s32.totalorder %v3094_v53, %v1000_v48  ;;  %v495_v58 = vmul.f32 1.442695, %v460_v54 }
  0xb8   :  { %v1643_v45 = vadd.s32 %v1642_v50, %v1638_v49  ;;  %2373 = vst [vmem:[#allocation2] sm:$0xff] %v2372_v26   ;;  %v429_v47 = vand.u32 2147483647, %v3100_v56  ;;  %v3107_v25 = vmul.f32 0.35355338, %v265_v32  ;;  %vm1087_vm11 = vcmp.eq.s32.totalorder %v3094_v53, %v997_v37  ;;  %v142_v26 = vld [vmem:[%s3779_s23 + $0xc0] sm:$0xff] }
  0xb9   :  { %vm2344_vm9 = vcmp.lt.s32.totalorder %v2343_v34, 0  ;;  %v1484_v40 = vadd.s32 %v2998_v0, %v3013_v9  ;;  %v2578_v51 = vmov 0.0   ;;  %2393 = vpow2.f32 %v495_v58  ;;  %v268_v9 = vpop.f32.mrf.mxu0 }
  0xba   :  { %v1499_v55 = vsel %vm2344_vm9, 0, %v2343_v34  ;;  %v1644_v28 = vadd.s32 536870912, %v1643_v45  ;;  %v461_v29 = vsub.f32 0.0, %v429_v47  ;;  %v2293_v17 = vsel %vm1088_vm10, 1.0, %v2578_v51 }
  0xbb   :  { %v1504_v57 = vsub.s32 4294967266, %v1499_v55  ;;  %v1500_v61 = vsub.s32 32, %v1499_v55  ;;  %v425_v19 = vand.u32 2147483647, %v3107_v25  ;;  %v2292_v27 = vsel %vm1087_vm11, 1.0, %v2578_v51 }
  0xbc   :  { %v3105_v63 = vshrl.u32 %v1644_v28, 30  ;;  %v2392_v11 = vpop.eup %2391  ;;  %v497_v0 = vmul.f32 1.442695, %v461_v29  ;;  %v1501_v13 = vshll.u32 %v3069_v12, %v1499_v55  ;;  %2217 = vmatmul.msk.f32.gmra.mxu1 %vm151_vm0, %v141_v16  ;;  %v1182_v39 = vpack.c.bf16 %v2293_v17, %v2292_v27 }
  0xbd   :  { %v1505_v62 = vadd.s32 127, %v1504_v57  ;;  %v1502_v21 = vshrl.u32 %v1484_v40, %v1500_v61  ;;  %v457_v20 = vsub.f32 0.0, %v425_v19  ;;  %v555_v22 = vadd.f32 1.0, %v2392_v11  ;;  %v1006_v57 = vpop.permute.xlu1 %1005 }
  0xbe   :  { %v1646_v8 = vshll.u32 %v3105_v63, 30  ;;  %v3132_v44 = vmul.f32 0.35355338, %v3058_v7  ;;  %v3134_v46 = vmul.f32 0.35355338, %v268_v9  ;;  %2395 = vpow2.f32 %v497_v0 }
  0xbf   :  { %v1506_v43 = vshll.u32 %v1505_v62, 23  ;;  %v2368_v38 = vld [vmem:[#allocation2] sm:$0xff]  ;;  %v489_v15 = vmul.f32 1.442695, %v457_v20  ;;  %v1503_v12 = vor.u32 %v1502_v21, %v1501_v13  ;;  %v2394_v49 = vpop.eup %2393  ;;  %v1639_v62 = vadd.s32 %v3081_v36, %v3079_v35 }
  0xc0   :  { %v3119_v30 = vsub.s32 %v1643_v45, %v1646_v8  ;;  %2376 = vmatpush.bf16.msra.mxu3 %v2368_v38  ;;  %1261 = vmatpush.bf16.msrb.mxu0 %v2368_v38  ;;  %v430_v32 = vand.u32 2147483647, %v3132_v44  ;;  %v426_v52 = vand.u32 2147483647, %v3134_v46  ;;  %v3139_v45 = vpop.f32.mrf.mxu1  ;;  %v556_v23 = vadd.f32 1.0, %v2394_v49 }
  0xc1   :  { %v1507_v31 = vor.u32 4788187, %v1506_v43  ;;  %2397 = vpow2.f32 %v489_v15  ;;  %v1510_v54 = vcvt.s32.f32 %v1503_v12  ;;  %v395_v40 = vmax.f32 %v3056_v5, 0.0  ;;  %v1003_v43 = vpop.permute.xlu0 %1002 }
  0xc2   :  { %vm1648_vm12 = vcmp.lt.s32.totalorder %v3119_v30, 0  ;;  %v1649_v4 = vsub.s32 0, %v3119_v30  ;;  %2399 = vlog2.f32 %v555_v22  ;;  %v462_v55 = vsub.f32 0.0, %v430_v32 }
  0xc3   :  { %v1508_v50 = vand.u32 2147483647, %v1507_v31  ;;  %2327 = vmatmul.msk.bf16.vlgmr.msra.gmra.mxu3 %vm82_vm1, %v1182_v39  ;;  %v458_v28 = vsub.f32 0.0, %v426_v52  ;;  %vm1090_vm14 = vcmp.eq.s32.totalorder %v3094_v53, %v1006_v57  ;;  %2401 = vlog2.f32 %v556_v23 }
  0xc4   :  { %v1650_v34 = vsel %vm1648_vm12, %v1649_v4, %v3119_v30  ;;  %2218 = vmatmul.msk.f32.gmra.mxu1 %vm151_vm0, %v142_v26  ;;  %v2396_v48 = vpop.eup %2395  ;;  %v499_v17 = vmul.f32 1.442695, %v462_v55  ;;  %vm1089_vm15 = vcmp.eq.s32.totalorder %v3094_v53, %v1003_v43  ;;  %vm1392_vm2 = vcmp.lt.s32.totalorder %v2898_v1, 0  ;;  %v3161_v4 = vpop.permute.xlu2 %1711 }
  0xc5   :  { %v1651_v24 = vclz %v1650_v34  ;;  %v1511_v58 = vmul.f32 %v1510_v54, %v1508_v50  ;;  %v491_v0 = vmul.f32 1.442695, %v458_v28  ;;  %v557_v35 = vadd.f32 1.0, %v2396_v48 }
  0xc6   :  { %v3156_v20 = vmul.f32 0.35355338, %v3091_v18  ;;  %v2295_v22 = vsel %vm1090_vm14, 1.0, %v2578_v51  ;;  %v2294_v38 = vsel %vm1089_vm15, 1.0, %v2578_v51  ;;  %v396_v12 = vmax.f32 %v3084_v42, 0.0 }
  0xc7   :  { %v2346_v7 = vadd.s32 4294967294, %v1651_v24  ;;  %v2398_v61 = vpop.eup %2397  ;;  %v1512_v9 = vxor.u32 2147483648, %v1511_v58  ;;  %vm3174_vm3 = vcmp.le.f32.partialorder %v1390_v3, 0.7853982  ;;  %vm1547_vm4 = vcmp.lt.s32.totalorder %v2900_v2, 0 }
  0xc8   :  { %v2400_v8 = vpop.eup %2399  ;;  %v553_v11 = vadd.f32 1.0, %v2398_v61  ;;  %v3152_v36 = vpop.f32.mrf.mxu1  ;;  %v431_v34 = vand.u32 2147483647, %v3156_v20  ;;  %v393_v42 = vmax.f32 %v3107_v25, 0.0  ;;  %vm3194_vm5 = vcmp.le.f32.partialorder %v1545_v6, 0.7853982 }
  0xc9   :  { %vm2347_vm13 = vcmp.lt.s32.totalorder %v2346_v7, 0  ;;  %v590_v13 = vmul.f32 0.6931472, %v2400_v8  ;;  %v2402_v15 = vpop.eup %2401  ;;  %v1513_v18 = vsel %vm1392_vm2, %v1512_v9, %v1511_v58  ;;  %v397_v43 = vmax.f32 %v3100_v56, 0.0  ;;  %v144_v8 = vld [vmem:[%s3779_s23 + $0xd0] sm:$0xff] }
  0xca   :  { %v1654_v47 = vsel %vm2347_vm13, 0, %v2346_v7  ;;  %2403 = vlog2.f32 %v553_v11  ;;  %v1183_v7 = vpack.c.bf16 %v2295_v22, %v2294_v38  ;;  %v463_v54 = vsub.f32 0.0, %v431_v34 }
  0xcb   :  { %v1655_v37 = vsub.s32 32, %v1654_v47  ;;  %v1659_v29 = vsub.s32 4294967266, %v1654_v47  ;;  %v1656_v19 = vshll.u32 %v3119_v30, %v1654_v47  ;;  %2405 = vpow2.f32 %v499_v17  ;;  %v143_v30 = vld [vmem:[%s3779_s23 + $0xc8] sm:$0xff] }
  0xcc   :  { %2407 = vpow2.f32 %v491_v0  ;;  %v651_v39 = vadd.f32 %v590_v13, %v395_v40  ;;  %2219 = vmatmul.msk.f32.gmra.mxu1 %vm151_vm0, %v143_v30  ;;  %v592_v57 = vmul.f32 0.6931472, %v2402_v15  ;;  %v3184_v3 = vsel %vm3174_vm3, %v2898_v1, %v1513_v18  ;;  %v1009_v9 = vpop.permute.xlu2 %1008 }
  0xcd   :  { %v1657_v21 = vshrl.u32 %v1639_v62, %v1655_v37  ;;  %v1660_v27 = vadd.s32 127, %v1659_v29  ;;  %2409 = vlog2.f32 %v557_v35  ;;  %v501_v58 = vmul.f32 1.442695, %v463_v54 }
  0xce   :  { %v2228_v32 = vadd.f32 -0.6931472, %v651_v39  ;;  %v3187_v47 = vmul.f32 0.35355338, %v3113_v10  ;;  %v652_v29 = vadd.f32 %v592_v57, %v396_v12  ;;  %v3208_v6 = vmul.f32 %v3184_v3, %v3184_v3  ;;  %v145_v39 = vld [vmem:[%s3779_s23 + $0xd8] sm:$0xff] }
  0xcf   :  { %v1658_v5 = vor.u32 %v1657_v21, %v1656_v19  ;;  %v1661_v16 = vshll.u32 %v1660_v27, 23  ;;  %v1012_v27 = vpop.permute.xlu0 %1011  ;;  %vm1091_vm6 = vcmp.eq.s32.totalorder %v3094_v53, %v1009_v9  ;;  %v3224_v13 = vmul.f32 0.35355338, %v3139_v45 }
  0xd0   :  { %v2404_v50 = vpop.eup %2403  ;;  %2260 = vmatmul.msk.f32.vlgmr.msra.gmra.mxu2 %vm151_vm0, %v2228_v32  ;;  %v3189_v61 = vpop.f32.mrf.mxu1  ;;  %v432_v10 = vand.u32 2147483647, %v3187_v47  ;;  %v2229_v21 = vadd.f32 -0.6931472, %v652_v29  ;;  %vm1092_vm7 = vcmp.eq.s32.totalorder %v3094_v53, %v1012_v27  ;;  %v2296_v18 = vsel %vm1091_vm6, 1.0, %v2578_v51 }
  0xd1   :  { %v1662_v31 = vor.u32 4788187, %v1661_v16  ;;  %v1665_v24 = vcvt.s32.f32 %v1658_v5  ;;  %v2406_v23 = vpop.eup %2405  ;;  %v586_v26 = vmul.f32 0.6931472, %v2404_v50  ;;  %v433_v12 = vand.u32 2147483647, %v3224_v13 }
  0xd2   :  { %v2408_v28 = vpop.eup %2407  ;;  %v558_v48 = vadd.f32 1.0, %v2406_v23  ;;  %v464_v0 = vsub.f32 0.0, %v432_v10  ;;  %v2297_v45 = vsel %vm1092_vm7, 1.0, %v2578_v51  ;;  %v394_v32 = vmax.f32 %v3134_v46, 0.0 }
  0xd3   :  { %v1663_v49 = vand.u32 2147483647, %v1662_v31  ;;  %v649_v37 = vadd.f32 %v586_v26, %v393_v42  ;;  %v554_v25 = vadd.f32 1.0, %v2408_v28  ;;  %2328 = vmatmul.msk.bf16.gmra.mxu3 %vm82_vm1, %v1183_v7  ;;  %v2410_v11 = vpop.eup %2409  ;;  %v1526_v31 = vmul.f32 -0.00019511016, %v3208_v6 }
  0xd4   :  { %2411 = vlog2.f32 %v558_v48  ;;  %2220 = vmatmul.msk.f32.gmra.mxu1 %vm151_vm0, %v144_v8  ;;  %v503_v5 = vmul.f32 1.442695, %v464_v0  ;;  %v594_v16 = vmul.f32 0.6931472, %v2410_v11  ;;  %v465_v54 = vsub.f32 0.0, %v433_v12  ;;  %v146_v8 = vld [vmem:[%s3779_s23 + $0xe0] sm:$0xff]  ;;  %v1015_v11 = vpop.permute.xlu1 %1014 }
  0xd5   :  { %v1666_v55 = vmul.f32 %v1665_v24, %v1663_v49  ;;  %v2226_v19 = vadd.f32 -0.6931472, %v649_v37  ;;  %2413 = vlog2.f32 %v554_v25  ;;  %v398_v24 = vmax.f32 %v3132_v44, 0.0 }
  0xd6   :  { %2415 = vpow2.f32 %v501_v58  ;;  %v653_v22 = vadd.f32 %v594_v16, %v397_v43  ;;  %v3238_v42 = vmul.f32 0.35355338, %v3152_v36  ;;  %v505_v57 = vmul.f32 1.442695, %v465_v54 }
  0xd7   :  { %v1667_v62 = vxor.u32 2147483648, %v1666_v55  ;;  %2258 = vmatmul.msk.f32.vlgmr.msra.gmra.mxu0 %vm151_vm0, %v2226_v19  ;;  %2417 = vpow2.f32 %v503_v5  ;;  %vm1086_vm8 = vcmp.eq.s32.totalorder %v3094_v53, %v3076_v33  ;;  %v1184_v44 = vpack.c.bf16 %v2297_v45, %v2296_v18 }
  0xd8   :  { %2261 = vmatmul.msk.f32.gmra.mxu2 %vm151_vm0, %v2229_v21  ;;  %v298_v38 = vpop.f32.mrf.mxu1  ;;  %v2230_v7 = vadd.f32 -0.6931472, %v653_v22  ;;  %v434_v46 = vand.u32 2147483647, %v3238_v42  ;;  %v3246_v43 = vmul.f32 0.35355338, %v3189_v61  ;;  %vm1085_vm9 = vcmp.eq.s32.totalorder %v3094_v53, %v3126_v14  ;;  %v1018_v22 = vpop.permute.xlu2 %1017 }
  0xd9   :  { %v1668_v17 = vsel %vm1547_vm4, %v1667_v62, %v1666_v55  ;;  %v1527_v55 = vadd.f32 0.008332121, %v1526_v31  ;;  %v2291_v61 = vsel %vm1086_vm8, 1.0, %v2578_v51  ;;  %v399_v27 = vmax.f32 %v3156_v20, 0.0 }
  0xda   :  { %v3213_v56 = vsel %vm3194_vm5, %v2900_v2, %v1668_v17  ;;  %v2412_v30 = vpop.eup %2411  ;;  %v466_v25 = vsub.f32 0.0, %v434_v46  ;;  %v435_v19 = vand.u32 2147483647, %v3246_v43  ;;  %v1514_v9 = vsub.s32 4, %v3051_v59 }
  0xdb   :  { %v3218_v35 = vmul.f32 %v3213_v56, %v3213_v56  ;;  %v2414_v15 = vpop.eup %2413  ;;  %v596_v23 = vmul.f32 0.6931472, %v2412_v30  ;;  %v1528_v36 = vmul.f32 %v1527_v55, %v3208_v6  ;;  %v2290_v31 = vsel %vm1085_vm9, 1.0, %v2578_v51 }
  0xdc   :  { %v2416_v34 = vpop.eup %2415  ;;  %2221 = vmatmul.msk.f32.gmra.mxu1 %vm151_vm0, %v145_v39  ;;  %v588_v26 = vmul.f32 0.6931472, %v2414_v15  ;;  %v507_v17 = vmul.f32 1.442695, %v466_v25  ;;  %v467_v39 = vsub.f32 0.0, %v435_v19  ;;  %vm1093_vm10 = vcmp.eq.s32.totalorder %v3094_v53, %v1015_v11 }
  0xdd   :  { %v1681_v49 = vmul.f32 -0.00019511016, %v3218_v35  ;;  %v559_v50 = vadd.f32 1.0, %v2416_v34  ;;  %v2418_v28 = vpop.eup %2417  ;;  %v654_v37 = vadd.f32 %v596_v23, %v398_v24  ;;  %v1529_v14 = vadd.f32 -0.16666654, %v1528_v36 }
  0xde   :  { %v650_v48 = vadd.f32 %v588_v26, %v394_v32  ;;  %v560_v62 = vadd.f32 1.0, %v2418_v28  ;;  %v3265_v15 = vmul.f32 0.35355338, %v298_v38  ;;  %vm1094_vm11 = vcmp.eq.s32.totalorder %v3094_v53, %v1018_v22  ;;  %v147_v38 = vld [vmem:[%s3779_s23 + $0xe8] sm:$0xff] }
  0xdf   :  { %2419 = vlog2.f32 %v559_v50  ;;  %v1682_v58 = vadd.f32 0.008332121, %v1681_v49  ;;  %v2231_v0 = vadd.f32 -0.6931472, %v654_v37  ;;  %v1515_v12 = vsel %vm1392_vm2, %v1514_v9, %v3051_v59 }
  0xe0   :  { %2262 = vmatmul.msk.f32.gmra.mxu2 %vm151_vm0, %v2230_v7  ;;  %2421 = vpow2.f32 %v505_v57  ;;  %v2227_v29 = vadd.f32 -0.6931472, %v650_v48  ;;  %v301_v10 = vpop.f32.mrf.mxu1  ;;  %v1530_v34 = vmul.f32 %v1529_v14, %v3208_v6  ;;  %v1181_v45 = vpack.c.bf16 %v2291_v61, %v2290_v31  ;;  %v1024_v48 = vpop.permute.xlu1 %1023 }
  0xe1   :  { %2423 = vlog2.f32 %v560_v62  ;;  %v1683_v5 = vmul.f32 %v1682_v58, %v3218_v35  ;;  %v2298_v32 = vsel %vm1093_vm10, 1.0, %v2578_v51  ;;  %v2299_v50 = vsel %vm1094_vm11, 1.0, %v2578_v51 }
  0xe2   :  { %2259 = vmatmul.msk.f32.gmra.mxu0 %vm151_vm0, %v2227_v29  ;;  %2425 = vpow2.f32 %v507_v17  ;;  %v509_v7 = vmul.f32 1.442695, %v467_v39  ;;  %v436_v54 = vand.u32 2147483647, %v3265_v15  ;;  %v1669_v23 = vsub.s32 4, %v3105_v63  ;;  %v1021_v17 = vpop.permute.xlu0 %1020 }
  0xe3   :  { %2329 = vmatmul.msk.bf16.gmra.mxu3 %vm82_vm1, %v1184_v44  ;;  %v1684_v49 = vadd.f32 -0.16666654, %v1683_v5  ;;  %v400_v59 = vmax.f32 %v3187_v47, 0.0  ;;  %v1531_v28 = vadd.f32 1.0, %v1530_v34  ;;  %v1185_v46 = vpack.c.bf16 %v2299_v50, %v2298_v32 }
  0xe4   :  { %2222 = vmatmul.msk.f32.gmra.mxu1 %vm151_vm0, %v146_v8  ;;  %v3285_v58 = vmul.f32 0.35355338, %v301_v10  ;;  %v468_v62 = vsub.f32 0.0, %v436_v54  ;;  %v1517_v47 = vsel %vm3174_vm3, 0, %v1515_v12  ;;  %v1519_v37 = vmul.f32 -0.001358992, %v3208_v6 }
  0xe5   :  { %v2420_v21 = vpop.eup %2419  ;;  %v1685_v44 = vmul.f32 %v1684_v49, %v3218_v35  ;;  %v1670_v36 = vsel %vm1547_vm4, %v1669_v23, %v3105_v63  ;;  %vm1096_vm12 = vcmp.eq.s32.totalorder %v3094_v53, %v1024_v48  ;;  %v1532_v11 = vmul.f32 %v1531_v28, %v3184_v3  ;;  %v148_v63 = vld [vmem:[%s3779_s23 + $0xf0] sm:$0xff] }
  0xe6   :  { %v598_v16 = vmul.f32 0.6931472, %v2420_v21  ;;  %v2422_v30 = vpop.eup %2421  ;;  %v1520_v10 = vadd.f32 0.041655596, %v1519_v37  ;;  %v437_v19 = vand.u32 2147483647, %v3285_v58  ;;  %vm1095_vm13 = vcmp.eq.s32.totalorder %v3094_v53, %v1021_v17 }
  0xe7   :  { %v561_v33 = vadd.f32 1.0, %v2422_v30  ;;  %v2424_v20 = vpop.eup %2423  ;;  %v1686_v52 = vadd.f32 1.0, %v1685_v44  ;;  %v1534_v21 = vadd.s32 3, %v1517_v47  ;;  %v1674_v3 = vmul.f32 -0.001358992, %v3218_v35 }
  0xe8   :  { %2263 = vmatmul.msk.f32.gmra.mxu2 %vm151_vm0, %v2231_v0  ;;  %v655_v18 = vadd.f32 %v598_v16, %v399_v27  ;;  %v304_v24 = vpop.f32.mrf.mxu1  ;;  %v600_v55 = vmul.f32 0.6931472, %v2424_v20  ;;  %v2426_v26 = vpop.eup %2425  ;;  %v1521_v27 = vmul.f32 %v1520_v10, %v3208_v6  ;;  %v1672_v0 = vsel %vm3194_vm5, 0, %v1670_v36 }
  0xe9   :  { %2427 = vlog2.f32 %v561_v33  ;;  %v562_v25 = vadd.f32 1.0, %v2426_v26  ;;  %v401_v9 = vmax.f32 %v3224_v13, 0.0  ;;  %v3309_v5 = vmul.f32 0.35355338, %v304_v24 }
  0xea   :  { %2326 = vmatmul.msk.bf16.vlgmr.msrb.gmra.mxu0 %vm82_vm1, %v1181_v45  ;;  %v2232_v57 = vadd.f32 -0.6931472, %v655_v18  ;;  %2429 = vpow2.f32 %v509_v7  ;;  %v656_v29 = vadd.f32 %v600_v55, %v400_v59  ;;  %v1522_v31 = vadd.f32 -0.4999988, %v1521_v27  ;;  %v149_v55 = vld [vmem:[%s3779_s23 + $0xf8] sm:$0xff] }
  0xeb   :  { %2431 = vrcp.f32 %v2890_v60  ;;  %v511_v60 = vmul.f32 1.442695, %v468_v62  ;;  %v1675_v22 = vadd.f32 0.041655596, %v1674_v3  ;;  %v1687_v39 = vmul.f32 %v1686_v52, %v3213_v56 }
  0xec   :  { %2223 = vmatmul.msk.f32.gmra.mxu1 %vm151_vm0, %v147_v38  ;;  %2433 = vlog2.f32 %v562_v25  ;;  %v2233_v14 = vadd.f32 -0.6931472, %v656_v29  ;;  %v469_v40 = vsub.f32 0.0, %v437_v19  ;;  %v1535_v33 = vand.u32 3, %v1534_v21 }
  0xed   :  { %v1689_v20 = vadd.s32 3, %v1672_v0  ;;  %2435 = vpow2.f32 %v511_v60  ;;  %v1523_v13 = vmul.f32 %v1522_v31, %v3208_v6  ;;  %v1538_v12 = vxor.u32 2147483648, %v1532_v11 }
  0xee   :  { %v1676_v34 = vmul.f32 %v1675_v22, %v3218_v35  ;;  %v2301_v49 = vsel %vm1096_vm12, 1.0, %v2578_v51  ;;  %v2300_v45 = vsel %vm1095_vm13, 1.0, %v2578_v51  ;;  %v402_v24 = vmax.f32 %v3238_v42, 0.0 }
  0xef   :  { %v2428_v8 = vpop.eup %2427  ;;  %v438_v32 = vand.u32 2147483647, %v3309_v5  ;;  %v1524_v50 = vadd.f32 1.0, %v1523_v13  ;;  %v513_v54 = vmul.f32 1.442695, %v469_v40  ;;  %vm1533_vm14 = vweird.f32 %v2898_v1  ;;  %v1030_v40 = vpop.permute.xlu0 %1029 }
  0xf0   :  { %2264 = vmatmul.msk.f32.gmra.mxu2 %vm151_vm0, %v2232_v57  ;;  %v3298_v61 = vpop.f32.mrf.mxu1  ;;  %v2430_v16 = vpop.eup %2429  ;;  %v602_v30 = vmul.f32 0.6931472, %v2428_v8  ;;  %v1677_v7 = vadd.f32 -0.4999988, %v1676_v34  ;;  %vm1537_vm15 = vcmp.eq.s32.totalorder %v1535_v33, 0  ;;  %v1690_v23 = vand.u32 3, %v1689_v20 }
  0xf1   :  { %v3314_v18 = vpop.eup %2431  ;;  %v563_v56 = vadd.f32 1.0, %v2430_v16  ;;  %v1539_v42 = vsel %vm1537_vm15, %v1524_v50, %v1538_v12  ;;  %v1541_v26 = vxor.u32 2147483648, %v1524_v50  ;;  %v1693_v28 = vxor.u32 2147483648, %v1687_v39  ;;  %v1027_v12 = vpop.permute.xlu2 %1026 }
  0xf2   :  { %v657_v38 = vadd.f32 %v602_v30, %v401_v9  ;;  %v2434_v6 = vpop.eup %2433  ;;  %v1678_v57 = vmul.f32 %v1677_v7, %v3218_v35  ;;  %vm1536_vm2 = vcmp.lt.s32.totalorder %v1535_v33, 2  ;;  %vm1540_vm3 = vcmp.eq.s32.totalorder %v1535_v33, 2 }
  0xf3   :  { %2330 = vmatmul.msk.bf16.gmra.mxu3 %vm82_vm1, %v1185_v46  ;;  %2437 = vlog2.f32 %v563_v56  ;;  %v1701_v44 = vperm.slane %v3314_v18, 0  ;;  %v2436_v46 = vpop.eup %2435  ;;  %v604_v62 = vmul.f32 0.6931472, %v2434_v6  ;;  %v1542_v47 = vsel %vm1540_vm3, %v1541_v26, %v1532_v11  ;;  %v1707_v11 = vld [vmem:[%s3756_s11] sm:$0xff] }
  0xf4   :  { %2224 = vmatmul.msk.f32.gmra.mxu1 %vm151_vm0, %v148_v63  ;;  %v2234_v48 = vadd.f32 -0.6931472, %v657_v38  ;;  %v1679_v37 = vadd.f32 1.0, %v1678_v57  ;;  %2439 = vpow2.f32 %v513_v54  ;;  %v470_v36 = vsub.f32 0.0, %v438_v32 }
  0xf5   :  { %v1543_v25 = vsel %vm1536_vm2, %v1539_v42, %v1542_v47  ;;  %vm1692_vm4 = vcmp.eq.s32.totalorder %v1690_v23, 0  ;;  %v3335_v8 = vmul.f32 0.35355338, %v3298_v61  ;;  %v564_v52 = vadd.f32 1.0, %v2436_v46 }
  0xf6   :  { %v1544_v35 = vsel %vm1533_vm14, nan, %v1543_v25  ;;  %v1694_v29 = vsel %vm1692_vm4, %v1679_v37, %v1693_v28  ;;  %v1696_v10 = vxor.u32 2147483648, %v1679_v37  ;;  %vm1695_vm5 = vcmp.eq.s32.totalorder %v1690_v23, 2  ;;  %v1033_v37 = vpop.permute.xlu1 %1032 }
  0xf7   :  { %v1705_v17 = vmul.f32 %v1701_v44, %v1544_v35  ;;  %v1702_v19 = vperm.slane %v3314_v18, 1  ;;  %v1186_v21 = vpack.c.bf16 %v2301_v49, %v2300_v45  ;;  %v658_v63 = vadd.f32 %v604_v62, %v402_v24  ;;  %v1888_v18 = vld [vmem:[%s3761_s16] sm:$0xff] }
  0xf8   :  { %2265 = vmatmul.msk.f32.gmra.mxu2 %vm151_vm0, %v2233_v14  ;;  %v310_v59 = vpop.f32.mrf.mxu1  ;;  %vm1691_vm6 = vcmp.lt.s32.totalorder %v1690_v23, 2  ;;  %v1697_v1 = vsel %vm1695_vm5, %v1696_v10, %v1687_v39  ;;  %vm1688_vm7 = vweird.f32 %v2900_v2  ;;  %v515_v0 = vmul.f32 1.442695, %v470_v36  ;;  %1891 = vperm.xlu2 %2390, %v1888_v18  }
  0xf9   :  { %v2438_v60 = vpop.eup %2437  ;;  %1732 = vmatpush.msra.mxu0 %v1705_v17  ;;  %v1698_v61 = vsel %vm1691_vm6, %v1694_v29, %v1697_v1  ;;  %v439_v9 = vand.u32 2147483647, %v3335_v8  ;;  %2441 = vlog2.f32 %v564_v52  ;;  %v403_v30 = vmax.f32 %v3246_v43, 0.0  ;;  %v1036_v35 = vpop.permute.xlu2 %1035 }
  0xfa   :  { %2348 = vmatmul.msk.f32.vlgmr.msra.gmra.mxu0 %vm151_vm0, %v1707_v11  ;;  %v1699_v3 = vsel %vm1688_vm7, nan, %v1698_v61  ;;  %v2440_v14 = vpop.eup %2439  ;;  %v2235_v31 = vadd.f32 -0.6931472, %v658_v63  ;;  %v606_v22 = vmul.f32 0.6931472, %v2438_v60  ;;  %2443 = vpow2.f32 %v515_v0 }
  0xfb   :  { %v1706_v16 = vmul.f32 %v1702_v19, %v1699_v3  ;;  %v471_v2 = vsub.f32 0.0, %v439_v9  ;;  %v3347_v39 = vmul.f32 0.35355338, %v310_v59  ;;  %v565_v33 = vadd.f32 1.0, %v2440_v14 }
  0xfc   :  { %2225 = vmatmul.msk.f32.gmra.mxu1 %vm151_vm0, %v149_v55  ;;  %v659_v20 = vadd.f32 %v606_v22, %v403_v30  ;;  %vm1097_vm8 = vcmp.eq.s32.totalorder %v3094_v53, %v1027_v12  ;;  %vm1098_vm9 = vcmp.eq.s32.totalorder %v3094_v53, %v1030_v40  ;;  %v404_v24 = vmax.f32 %v3265_v15, 0.0 }
  0xfd   :  { %1752 = vmatpush.msrb.mxu0 %v1706_v16  ;;  %v517_v43 = vmul.f32 1.442695, %v471_v2  ;;  %v440_v49 = vand.u32 2147483647, %v3347_v39  ;;  %2445 = vlog2.f32 %v565_v33  ;;  %v2302_v32 = vsel %vm1097_vm8, 1.0, %v2578_v51 }
  0xfe   :  { %v2236_v56 = vadd.f32 -0.6931472, %v659_v20  ;;  %v2303_v50 = vsel %vm1098_vm9, 1.0, %v2578_v51  ;;  %v405_v28 = vmax.f32 %v3285_v58, 0.0  ;;  %vm1099_vm10 = vcmp.eq.s32.totalorder %v3094_v53, %v1033_v37  ;;  %v1042_v33 = vpop.permute.xlu1 %1041  ;;  %v1039_v20 = vpop.permute.xlu0 %1038 }
  0xff   :  { %v2442_v13 = vpop.eup %2441  ;;  %2447 = vpow2.f32 %v517_v43  ;;  %v472_v7 = vsub.f32 0.0, %v440_v49  ;;  %v1187_v23 = vpack.c.bf16 %v2303_v50, %v2302_v32  ;;  %vm1100_vm11 = vcmp.eq.s32.totalorder %v3094_v53, %v1036_v35 }
 0x100   :  { %2266 = vmatmul.msk.f32.gmra.mxu2 %vm151_vm0, %v2234_v48  ;;  %v313_v27 = vpop.f32.mrf.mxu1  ;;  %v2444_v45 = vpop.eup %2443  ;;  %v608_v38 = vmul.f32 0.6931472, %v2442_v13  ;;  %v406_v17 = vmax.f32 %v3309_v5, 0.0  ;;  %v2305_v63 = vsel %vm1100_vm11, 1.0, %v2578_v51  ;;  %v407_v30 = vmax.f32 %v3335_v8, 0.0 }
 0x101   :  { %v3360_v6 = vmul.f32 0.35355338, %v313_v27  ;;  %v566_v54 = vadd.f32 1.0, %v2444_v45  ;;  %v519_v26 = vmul.f32 1.442695, %v472_v7  ;;  %vm1102_vm12 = vcmp.eq.s32.totalorder %v3094_v53, %v1042_v33  ;;  %v1045_v35 = vpop.permute.xlu2 %1044 }
 0x102   :  { %2349 = vmatmul.msk.f32.vlgmr.msrb.gmra.mxu0 %vm151_vm0, %v1707_v11  ;;  %v660_v59 = vadd.f32 %v608_v38, %v404_v24  ;;  %vm1101_vm13 = vcmp.eq.s32.totalorder %v3094_v53, %v1039_v20  ;;  %v408_v45 = vmax.f32 %v3347_v39, 0.0  ;;  %v2307_v38 = vsel %vm1102_vm12, 1.0, %v2578_v51 }
 0x103   :  { %2331 = vmatmul.msk.bf16.gmra.mxu3 %vm82_vm1, %v1186_v21  ;;  %v2446_v55 = vpop.eup %2445  ;;  %v441_v15 = vand.u32 2147483647, %v3360_v6  ;;  %2449 = vlog2.f32 %v566_v54  ;;  %v2304_v21 = vsel %vm1099_vm10, 1.0, %v2578_v51  ;;  %v2306_v32 = vsel %vm1101_vm13, 1.0, %v2578_v51 }
 0x104   :  { %v2237_v44 = vadd.f32 -0.6931472, %v660_v59  ;;  %v610_v46 = vmul.f32 0.6931472, %v2446_v55  ;;  %2451 = vpow2.f32 %v519_v26  ;;  %v1188_v27 = vpack.c.bf16 %v2305_v63, %v2304_v21 }
 0x105   :  { %v2448_v57 = vpop.eup %2447  ;;  %v473_v48 = vsub.f32 0.0, %v441_v15  ;;  %vm1103_vm14 = vcmp.eq.s32.totalorder %v3094_v53, %v1045_v35 }
 0x106   :  { %v567_v47 = vadd.f32 1.0, %v2448_v57  ;;  %v661_v36 = vadd.f32 %v610_v46, %v405_v28  ;;  %v409_v57 = vmax.f32 %v3360_v6, 0.0 }
 0x107   :  { %v521_v10 = vmul.f32 1.442695, %v473_v48 }
 0x108   :  { %2267 = vmatmul.msk.f32.gmra.mxu2 %vm151_vm0, %v2235_v31  ;;  %v316_v34 = vpop.f32.mrf.mxu1  ;;  %2453 = vlog2.f32 %v567_v47  ;;  %v2238_v11 = vadd.f32 -0.6931472, %v661_v36  ;;  %v1048_v47 = vpop.permute.xlu0 %1047 }
 0x109   :  { %v3366_v62 = vmul.f32 0.35355338, %v316_v34  ;;  %v2450_v25 = vpop.eup %2449  ;;  %2455 = vpow2.f32 %v521_v10  ;;  %vm1104_vm15 = vcmp.eq.s32.totalorder %v3094_v53, %v1048_v47 }
 0x10a   :  { %v2452_v52 = vpop.eup %2451  ;;  %v612_v19 = vmul.f32 0.6931472, %v2450_v25  ;;  %v2309_v21 = vsel %vm1104_vm15, 1.0, %v2578_v51 }
 0x10b   :  { %v442_v58 = vand.u32 2147483647, %v3366_v62  ;;  %v568_v61 = vadd.f32 1.0, %v2452_v52  ;;  %v410_v52 = vmax.f32 %v3366_v62, 0.0 }
 0x10c   :  { %v662_v0 = vadd.f32 %v612_v19, %v406_v17  ;;  %v2308_v19 = vsel %vm1103_vm14, 1.0, %v2578_v51 }
 0x10d   :  { %v474_v1 = vsub.f32 0.0, %v442_v58  ;;  %2457 = vlog2.f32 %v568_v61 }
 0x10e   :  { %v2454_v3 = vpop.eup %2453  ;;  %v2239_v31 = vadd.f32 -0.6931472, %v662_v0 }
 0x10f   :  { %v523_v14 = vmul.f32 1.442695, %v474_v1  ;;  %v2456_v16 = vpop.eup %2455  ;;  %v614_v22 = vmul.f32 0.6931472, %v2454_v3 }
 0x110   :  { %2268 = vmatmul.msk.f32.gmra.mxu2 %vm151_vm0, %v2236_v56  ;;  %v319_v42 = vpop.f32.mrf.mxu1  ;;  %v569_v18 = vadd.f32 1.0, %v2456_v16 }
 0x111   :  { %v3375_v60 = vmul.f32 0.35355338, %v319_v42  ;;  %2459 = vpow2.f32 %v523_v14  ;;  %v663_v13 = vadd.f32 %v614_v22, %v407_v30 }
 0x112   :  { %2461 = vlog2.f32 %v569_v18 }
 0x113   :  { %2332 = vmatmul.msk.bf16.gmra.mxu3 %vm82_vm1, %v1187_v23  ;;  %v443_v5 = vand.u32 2147483647, %v3375_v60  ;;  %v2458_v12 = vpop.eup %2457  ;;  %v2240_v24 = vadd.f32 -0.6931472, %v663_v13  ;;  %v1189_v23 = vpack.c.bf16 %v2307_v38, %v2306_v32  ;;  %v411_v16 = vmax.f32 %v3375_v60, 0.0 }
 0x114   :  { %v616_v56 = vmul.f32 0.6931472, %v2458_v12  ;;  %v1051_v12 = vpop.permute.xlu1 %1050 }
 0x115   :  { %v475_v2 = vsub.f32 0.0, %v443_v5  ;;  %vm1105_vm2 = vcmp.eq.s32.totalorder %v3094_v53, %v1051_v12 }
 0x116   :  { %v664_v59 = vadd.f32 %v616_v56, %v408_v45  ;;  %v2310_v38 = vsel %vm1105_vm2, 1.0, %v2578_v51 }
 0x117   :  { %v525_v43 = vmul.f32 1.442695, %v475_v2  ;;  %v2460_v49 = vpop.eup %2459 }
 0x118   :  { %2269 = vmatmul.msk.f32.gmra.mxu2 %vm151_vm0, %v2237_v44  ;;  %v322_v29 = vpop.f32.mrf.mxu1  ;;  %v570_v54 = vadd.f32 1.0, %v2460_v49  ;;  %v2462_v55 = vpop.eup %2461  ;;  %v2241_v28 = vadd.f32 -0.6931472, %v664_v59 }
 0x119   :  { %v3381_v40 = vmul.f32 0.35355338, %v322_v29  ;;  %2463 = vpow2.f32 %v525_v43  ;;  %v618_v44 = vmul.f32 0.6931472, %v2462_v55 }
 0x11a   :  { %2465 = vlog2.f32 %v570_v54 }
 0x11b   :  { %v444_v8 = vand.u32 2147483647, %v3381_v40  ;;  %v665_v36 = vadd.f32 %v618_v44, %v409_v57  ;;  %v412_v45 = vmax.f32 %v3381_v40, 0.0 }
 0x11d   :  { %v476_v50 = vsub.f32 0.0, %v444_v8  ;;  %v2242_v17 = vadd.f32 -0.6931472, %v665_v36 }
 0x11f   :  { %v527_v26 = vmul.f32 1.442695, %v476_v50  ;;  %v2464_v15 = vpop.eup %2463 }
 0x120   :  { %2270 = vmatmul.msk.f32.gmra.mxu2 %vm151_vm0, %v2238_v11  ;;  %v325_v9 = vpop.f32.mrf.mxu1  ;;  %v571_v37 = vadd.f32 1.0, %v2464_v15  ;;  %v2466_v25 = vpop.eup %2465 }
 0x121   :  { %v3390_v7 = vmul.f32 0.35355338, %v325_v9  ;;  %2467 = vpow2.f32 %v527_v26  ;;  %v620_v11 = vmul.f32 0.6931472, %v2466_v25 }
 0x122   :  { %2469 = vlog2.f32 %v571_v37 }
 0x123   :  { %2333 = vmatmul.msk.bf16.gmra.mxu3 %vm82_vm1, %v1188_v27  ;;  %v445_v39 = vand.u32 2147483647, %v3390_v7  ;;  %v1190_v27 = vpack.c.bf16 %v2309_v21, %v2308_v19  ;;  %v666_v0 = vadd.f32 %v620_v11, %v410_v52  ;;  %v413_v15 = vmax.f32 %v3390_v7, 0.0 }
 0x125   :  { %v477_v46 = vsub.f32 0.0, %v445_v39  ;;  %v2243_v30 = vadd.f32 -0.6931472, %v666_v0 }
 0x127   :  { %v529_v10 = vmul.f32 1.442695, %v477_v46  ;;  %v2468_v58 = vpop.eup %2467 }
 0x128   :  { %2271 = vmatmul.msk.f32.gmra.mxu2 %vm151_vm0, %v2239_v31  ;;  %v328_v34 = vpop.f32.mrf.mxu1  ;;  %v572_v61 = vadd.f32 1.0, %v2468_v58  ;;  %v2470_v3 = vpop.eup %2469 }
 0x129   :  { %v3396_v48 = vmul.f32 0.35355338, %v328_v34  ;;  %2471 = vpow2.f32 %v529_v10  ;;  %v622_v31 = vmul.f32 0.6931472, %v2470_v3  ;;  %v1054_v34 = vpop.permute.xlu2 %1053  ;;  %v1057_v58 = vpop.permute.xlu0 %1056 }
 0x12a   :  { %2473 = vlog2.f32 %v572_v61  ;;  %vm1106_vm3 = vcmp.eq.s32.totalorder %v3094_v53, %v1054_v34  ;;  %vm1107_vm5 = vcmp.eq.s32.totalorder %v3094_v53, %v1057_v58 }
 0x12b   :  { %v446_v6 = vand.u32 2147483647, %v3396_v48  ;;  %v667_v18 = vadd.f32 %v622_v31, %v411_v16  ;;  %v2311_v32 = vsel %vm1106_vm3, 1.0, %v2578_v51  ;;  %v414_v21 = vmax.f32 %v3396_v48, 0.0 }
 0x12c   :  { %v1191_v55 = vpack.c.bf16 %v2311_v32, %v2310_v38 }
 0x12d   :  { %v478_v63 = vsub.f32 0.0, %v446_v6  ;;  %v1060_v6 = vpop.permute.xlu1 %1059 }
 0x12e   :  { %vm1108_vm4 = vcmp.eq.s32.totalorder %v3094_v53, %v1060_v6 }
 0x12f   :  { %v531_v14 = vmul.f32 1.442695, %v478_v63  ;;  %v2472_v5 = vpop.eup %2471 }
 0x130   :  { %2272 = vmatmul.msk.f32.gmra.mxu2 %vm151_vm0, %v2240_v24  ;;  %v573_v20 = vadd.f32 1.0, %v2472_v5  ;;  %v2474_v13 = vpop.eup %2473  ;;  %v2244_v24 = vadd.f32 -0.6931472, %v667_v18 }
 0x131   :  { %v331_v42 = vpop.f32.mrf.mxu1  ;;  %2475 = vpow2.f32 %v531_v14  ;;  %v624_v56 = vmul.f32 0.6931472, %v2474_v13  ;;  %v2312_v14 = vsel %vm1107_vm5, 1.0, %v2578_v51 }
 0x132   :  { %v3405_v1 = vmul.f32 0.35355338, %v331_v42  ;;  %2477 = vlog2.f32 %v573_v20 }
 0x133   :  { %2334 = vmatmul.msk.bf16.gmra.mxu3 %vm82_vm1, %v1189_v23  ;;  %v668_v42 = vadd.f32 %v624_v56, %v412_v45 }
 0x134   :  { %v447_v62 = vand.u32 2147483647, %v3405_v1  ;;  %v415_v34 = vmax.f32 %v3405_v1, 0.0 }
 0x135   :  { %v2245_v46 = vadd.f32 -0.6931472, %v668_v42 }
 0x136   :  { %v479_v2 = vsub.f32 0.0, %v447_v62 }
 0x137   :  { %v2476_v49 = vpop.eup %2475 }
 0x138   :  { %2273 = vmatmul.msk.f32.gmra.mxu2 %vm151_vm0, %v2241_v28  ;;  %v533_v43 = vmul.f32 1.442695, %v479_v2  ;;  %v574_v59 = vadd.f32 1.0, %v2476_v49  ;;  %v2478_v26 = vpop.eup %2477 }
 0x139   :  { %v334_v29 = vpop.f32.mrf.mxu1  ;;  %v626_v47 = vmul.f32 0.6931472, %v2478_v26 }
 0x13a   :  { %v3411_v33 = vmul.f32 0.35355338, %v334_v29  ;;  %2479 = vpow2.f32 %v533_v43 }
 0x13b   :  { %2481 = vlog2.f32 %v574_v59  ;;  %v669_v7 = vadd.f32 %v626_v47, %v413_v15 }
 0x13c   :  { %v448_v60 = vand.u32 2147483647, %v3411_v33 }
 0x13d   :  { %v2246_v0 = vadd.f32 -0.6931472, %v669_v7 }
 0x13e   :  { %v480_v54 = vsub.f32 0.0, %v448_v60 }
 0x140   :  { %2274 = vmatmul.msk.f32.gmra.mxu2 %vm151_vm0, %v2242_v17  ;;  %v535_v39 = vmul.f32 1.442695, %v480_v54  ;;  %v2480_v28 = vpop.eup %2479  ;;  %v1063_v54 = vpop.permute.xlu0 %1062 }
 0x141   :  { %v337_v9 = vpop.f32.mrf.mxu1  ;;  %v575_v52 = vadd.f32 1.0, %v2480_v28  ;;  %v2482_v17 = vpop.eup %2481  ;;  %vm1109_vm7 = vcmp.eq.s32.totalorder %v3094_v53, %v1063_v54  ;;  %v416_v28 = vmax.f32 %v3411_v33, 0.0 }
 0x142   :  { %v3420_v23 = vmul.f32 0.35355338, %v337_v9  ;;  %2483 = vpow2.f32 %v535_v39  ;;  %v628_v3 = vmul.f32 0.6931472, %v2482_v17  ;;  %v2313_v9 = vsel %vm1108_vm4, 1.0, %v2578_v51  ;;  %v3462_v17 = vpop.permute.xlu2 %1801 }
 0x143   :  { %2335 = vmatmul.msk.bf16.gmra.mxu3 %vm82_vm1, %v1190_v27  ;;  %2485 = vlog2.f32 %v575_v52  ;;  %v1192_v48 = vpack.c.bf16 %v2313_v9, %v2312_v14 }
 0x144   :  { %v449_v40 = vand.u32 2147483647, %v3420_v23  ;;  %v670_v20 = vadd.f32 %v628_v3, %v414_v21  ;;  %v417_v14 = vmax.f32 %v3420_v23, 0.0 }
 0x146   :  { %v1268_v22 = vpop.f32.mrf.mxu3  ;;  %v481_v29 = vsub.f32 0.0, %v449_v40  ;;  %v2247_v49 = vadd.f32 -0.6931472, %v670_v20 }
 0x148   :  { %2275 = vmatmul.msk.f32.gmra.mxu2 %vm151_vm0, %v2243_v30  ;;  %v537_v11 = vmul.f32 1.442695, %v481_v29  ;;  %v2484_v61 = vpop.eup %2483  ;;  %v2314_v29 = vsel %vm1109_vm7, 1.0, %v2578_v51 }
 0x149   :  { %v340_v8 = vpop.f32.mrf.mxu1  ;;  %v2486_v18 = vpop.eup %2485 }
 0x14a   :  { %v3428_v10 = vmul.f32 0.35355338, %v340_v8  ;;  %2487 = vpow2.f32 %v537_v11  ;;  %v630_v45 = vmul.f32 0.6931472, %v2486_v18 }
 0x14c   :  { %v450_v19 = vand.u32 2147483647, %v3428_v10  ;;  %v671_v42 = vadd.f32 %v630_v45, %v415_v34  ;;  %v1072_v34 = vpop.permute.xlu0 %1071 }
 0x14d   :  { %vm1112_vm9 = vcmp.eq.s32.totalorder %v3094_v53, %v1072_v34 }
 0x14e   :  { %v1270_v50 = vpop.f32.mrf.mxu3  ;;  %v482_v16 = vsub.f32 0.0, %v450_v19 }
 0x150   :  { %2276 = vmatmul.msk.f32.gmra.mxu2 %vm151_vm0, %v2244_v24  ;;  %v539_v13 = vmul.f32 1.442695, %v482_v16  ;;  %v2488_v60 = vpop.eup %2487 }
 0x151   :  { %v343_v37 = vpop.f32.mrf.mxu1 }
 0x152   :  { %v3439_v30 = vmul.f32 0.35355338, %v343_v37  ;;  %v2248_v37 = vadd.f32 -0.6931472, %v671_v42  ;;  %v2317_v42 = vsel %vm1112_vm9, 1.0, %v2578_v51 }
 0x153   :  { %2336 = vmatmul.msk.bf16.gmra.mxu3 %vm82_vm1, %v1191_v55  ;;  %v833_v57 = vpop.f32.mrf.mxu2  ;;  %v577_v55 = vadd.f32 1.0, %v2488_v60 }
 0x154   :  { %v925_v44 = vmul.f32 0.35355338, %v833_v57  ;;  %v827_v35 = vpop.f32.mrf.mxu0  ;;  %v451_v12 = vand.u32 2147483647, %v3439_v30 }
 0x155   :  { %v923_v59 = vmul.f32 0.35355338, %v827_v35 }
 0x156   :  { %v1273_v36 = vpop.f32.mrf.mxu3  ;;  %v3426_v25 = vmul.f32 %v1268_v22, %v925_v44  ;;  %v576_v22 = vadd.f32 1.0, %v2484_v61  ;;  %v483_v38 = vsub.f32 0.0, %v451_v12 }
 0x158   :  { %2277 = vmatmul.msk.f32.gmra.mxu2 %vm151_vm0, %v2245_v46  ;;  %2489 = vlog2.f32 %v576_v22  ;;  %v541_v15 = vmul.f32 1.442695, %v483_v38  ;;  %v418_v38 = vmax.f32 %v3428_v10, 0.0 }
 0x159   :  { %v346_v31 = vpop.f32.mrf.mxu1  ;;  %2491 = vpow2.f32 %v539_v13 }
 0x15a   :  { %v3447_v32 = vmul.f32 0.35355338, %v346_v31  ;;  %2493 = vlog2.f32 %v577_v55 }
 0x15b   :  { %v836_v63 = vpop.f32.mrf.mxu2  ;;  %2495 = vpow2.f32 %v541_v15 }
 0x15c   :  { %v926_v27 = vmul.f32 0.35355338, %v836_v63  ;;  %v452_v57 = vand.u32 2147483647, %v3447_v32 }
 0x15e   :  { %v1275_v62 = vpop.f32.mrf.mxu3  ;;  %v3437_v5 = vmul.f32 %v1270_v50, %v926_v27  ;;  %v1066_v50 = vpop.permute.xlu1 %1065  ;;  %v484_v7 = vsub.f32 0.0, %v452_v57 }
 0x15f   :  { %v830_v2 = vpop.f32.mrf.mxu0  ;;  %v2490_v39 = vpop.eup %2489  ;;  %vm1110_vm6 = vcmp.eq.s32.totalorder %v3094_v53, %v1066_v50 }
 0x160   :  { %2278 = vmatmul.msk.f32.gmra.mxu2 %vm151_vm0, %v2246_v0  ;;  %v2492_v46 = vpop.eup %2491  ;;  %v2315_v35 = vsel %vm1110_vm6, 1.0, %v2578_v51  ;;  %v924_v33 = vmul.f32 0.35355338, %v830_v2  ;;  %v543_v3 = vmul.f32 1.442695, %v484_v7 }
 0x161   :  { %v349_v26 = vpop.f32.mrf.mxu1  ;;  %v578_v11 = vadd.f32 1.0, %v2492_v46  ;;  %v1193_v19 = vpack.c.bf16 %v2315_v35, %v2314_v29  ;;  %v2494_v61 = vpop.eup %2493 }
 0x162   :  { %v3458_v58 = vmul.f32 0.35355338, %v349_v26  ;;  %v2496_v31 = vpop.eup %2495  ;;  %v634_v2 = vmul.f32 0.6931472, %v2494_v61 }
 0x163   :  { %2337 = vmatmul.msk.bf16.gmra.mxu3 %vm82_vm1, %v1192_v48  ;;  %v839_v43 = vpop.f32.mrf.mxu2  ;;  %2497 = vlog2.f32 %v578_v11 }
 0x164   :  { %v927_v8 = vmul.f32 0.35355338, %v839_v43  ;;  %v453_v0 = vand.u32 2147483647, %v3458_v58  ;;  %2499 = vpow2.f32 %v543_v3  ;;  %v579_v43 = vadd.f32 1.0, %v2496_v31 }
 0x165   :  { %v673_v23 = vadd.f32 %v634_v2, %v417_v14 }
 0x166   :  { %v1278_v24 = vpop.f32.mrf.mxu3  ;;  %v3445_v56 = vmul.f32 %v1273_v36, %v927_v8  ;;  %v632_v36 = vmul.f32 0.6931472, %v2490_v39  ;;  %v485_v18 = vsub.f32 0.0, %v453_v0  ;;  %v1069_v8 = vpop.permute.xlu2 %1068  ;;  %2501 = vlog2.f32 %v579_v43 }
 0x167   :  { %v1263_v1 = vpop.f32.mrf.mxu0  ;;  %vm1111_vm8 = vcmp.eq.s32.totalorder %v3094_v53, %v1069_v8  ;;  %v1075_v61 = vpop.permute.xlu1 %1074  ;;  %v420_v8 = vmax.f32 %v3447_v32, 0.0 }
 0x168   :  { %2279 = vmatmul.msk.f32.gmra.mxu2 %vm151_vm0, %v2247_v49  ;;  %v3450_v40 = vmul.f32 %v1263_v1, %v923_v59  ;;  %v672_v63 = vadd.f32 %v632_v36, %v416_v28  ;;  %v545_v49 = vmul.f32 1.442695, %v485_v18  ;;  %v2250_v59 = vadd.f32 -0.6931472, %v673_v23 }
 0x169   :  { %v352_v9 = vpop.f32.mrf.mxu1  ;;  %v2498_v60 = vpop.eup %2497  ;;  %v2316_v1 = vsel %vm1111_vm8, 1.0, %v2578_v51  ;;  %vm1113_vm10 = vcmp.eq.s32.totalorder %v3094_v53, %v1075_v61 }
 0x16a   :  { %v2249_v48 = vadd.f32 -0.6931472, %v672_v63  ;;  %v3472_v13 = vmul.f32 0.35355338, %v352_v9  ;;  %v2500_v50 = vpop.eup %2499  ;;  %v636_v55 = vmul.f32 0.6931472, %v2498_v60  ;;  %2503 = vpow2.f32 %v545_v49  ;;  %v1081_v61 = vpop.permute.xlu0 %1080 }
 0x16b   :  { %v842_v44 = vpop.f32.mrf.mxu2  ;;  %v580_v28 = vadd.f32 1.0, %v2500_v50  ;;  %v1194_v10 = vpack.c.bf16 %v2317_v42, %v2316_v1  ;;  %v2318_v50 = vsel %vm1113_vm10, 1.0, %v2578_v51  ;;  %vm1115_vm14 = vcmp.eq.s32.totalorder %v3094_v53, %v1081_v61 }
 0x16c   :  { %v928_v47 = vmul.f32 0.35355338, %v842_v44  ;;  %v454_v45 = vand.u32 2147483647, %v3472_v13  ;;  %v2502_v36 = vpop.eup %2501 }
 0x16d   :  { %2505 = vlog2.f32 %v580_v28 }
 0x16e   :  { %v1280_v6 = vpop.f32.mrf.mxu3  ;;  %v3460_v52 = vmul.f32 %v1275_v62, %v928_v47  ;;  %v486_v39 = vsub.f32 0.0, %v454_v45  ;;  %v674_v47 = vadd.f32 %v636_v55, %v418_v38  ;;  %v1078_v3 = vpop.permute.xlu2 %1077 }
 0x16f   :  { %v1265_v21 = vpop.f32.mrf.mxu0  ;;  %vm1114_vm11 = vcmp.eq.s32.totalorder %v3094_v53, %v1078_v3 }
 0x170   :  { %2280 = vmatmul.msk.f32.gmra.mxu2 %vm151_vm0, %v2248_v37  ;;  %v3465_v27 = vmul.f32 %v1265_v21, %v924_v33  ;;  %v547_v35 = vmul.f32 1.442695, %v486_v39  ;;  %v2504_v7 = vpop.eup %2503  ;;  %v419_v33 = vmax.f32 %v3439_v30, 0.0  ;;  %v2251_v63 = vadd.f32 -0.6931472, %v674_v47 }
 0x171   :  { %v355_v57 = vpop.f32.mrf.mxu1  ;;  %v581_v9 = vadd.f32 1.0, %v2504_v7  ;;  %v421_v47 = vmax.f32 %v3458_v58, 0.0 }
 0x172   :  { %v2034_v16 = vpack.c.bf16 %v3465_v27, %v3450_v40  ;;  %v3485_v46 = vmul.f32 0.35355338, %v355_v57 }
 0x173   :  { %2338 = vmatmul.msk.bf16.gmra.mxu3 %vm82_vm1, %v1193_v19  ;;  %v845_v62 = vpop.f32.mrf.mxu2  ;;  %v638_v19 = vmul.f32 0.6931472, %v2502_v36  ;;  %v2506_v18 = vpop.eup %2505 }
 0x174   :  { %v929_v22 = vmul.f32 0.35355338, %v845_v62 }
 0x175   :  { %v675_v2 = vadd.f32 %v638_v19, %v419_v33  ;;  %v1084_v19 = vpop.permute.xlu1 %1083 }
 0x176   :  { %v1283_v20 = vpop.f32.mrf.mxu3  ;;  %v3474_v12 = vmul.f32 %v1278_v24, %v929_v22  ;;  %vm1116_vm13 = vcmp.eq.s32.totalorder %v3094_v53, %v1084_v19  ;;  %v1892_v40 = vpop.permute.xlu2 %1891 }
 0x177   :  { %v1734_v44 = vpop.f32.mrf.mxu0  ;;  %v2252_v38 = vadd.f32 -0.6931472, %v675_v2  ;;  %v422_v2 = vmax.f32 %v3472_v13, 0.0  ;;  %v2320_v13 = vsel %vm1115_vm14, 1.0, %v2578_v51 }
 0x178   :  { %2281 = vmatmul.msk.f32.gmra.mxu2 %vm151_vm0, %v2249_v48  ;;  %v3489_v37 = vadd.f32 %v1734_v44, %v3161_v4 }
 0x179   :  { %v358_v31 = vpop.f32.mrf.mxu1 }
 0x17a   :  { %v2350_v29 = vmul.f32 -1.442695, %v3489_v37  ;;  %v3497_v48 = vmul.f32 0.35355338, %v358_v31 }
 0x17b   :  { %v848_v24 = vpop.f32.mrf.mxu2 }
 0x17c   :  { %v930_v54 = vmul.f32 0.35355338, %v848_v24  ;;  %2507 = vpow2.f32 %v2350_v29  ;;  %v456_v23 = vand.u32 2147483647, %v3497_v48 }
 0x17d   :  { %2509 = vpow2.f32 %v547_v35 }
 0x17e   :  { %v1285_v26 = vpop.f32.mrf.mxu3  ;;  %v3483_v15 = vmul.f32 %v1280_v6, %v930_v54  ;;  %v455_v6 = vand.u32 2147483647, %v3485_v46  ;;  %2511 = vlog2.f32 %v581_v9  ;;  %v2319_v54 = vsel %vm1114_vm11, 1.0, %v2578_v51 }
 0x17f   :  { %v1754_v22 = vpop.f32.mrf.mxu0  ;;  %v488_v42 = vsub.f32 0.0, %v456_v23  ;;  %v1195_v57 = vpack.c.bf16 %v2319_v54, %v2318_v50  ;;  %v2036_v50 = vpack.c.bf16 %v3460_v52, %v3445_v56 }
 0x180   :  { %2282 = vmatmul.msk.f32.gmra.mxu2 %vm151_vm0, %v2250_v59  ;;  %v487_v62 = vsub.f32 0.0, %v455_v6  ;;  %v3501_v30 = vadd.f32 %v1754_v22, %v3161_v4  ;;  %v640_v4 = vmul.f32 0.6931472, %v2506_v18 }
 0x181   :  { %v551_v44 = vmul.f32 1.442695, %v488_v42 }
 0x182   :  { %v2508_v34 = vpop.eup %2507  ;;  %v2351_v43 = vmul.f32 -1.442695, %v3501_v30  ;;  %v676_v32 = vadd.f32 %v640_v4, %v420_v8  ;;  %v2321_v4 = vsel %vm1116_vm13, 1.0, %v2578_v51 }
 0x183   :  { %2339 = vmatmul.msk.bf16.gmra.mxu3 %vm82_vm1, %v1194_v10  ;;  %v851_v11 = vpop.f32.mrf.mxu2  ;;  %v2510_v60 = vpop.eup %2509  ;;  %v1763_v49 = vadd.f32 1.0, %v2508_v34  ;;  %v1196_v53 = vpack.c.bf16 %v2321_v4, %v2320_v13 }
 0x184   :  { %v931_v21 = vmul.f32 0.35355338, %v851_v11  ;;  %2513 = vpow2.f32 %v2351_v43  ;;  %v582_v55 = vadd.f32 1.0, %v2510_v60  ;;  %v2512_v39 = vpop.eup %2511  ;;  %v2253_v6 = vadd.f32 -0.6931472, %v676_v32 }
 0x185   :  { %2515 = vrcp.f32 %v1763_v49  ;;  %v642_v36 = vmul.f32 0.6931472, %v2512_v39  ;;  %v1776_v58 = vand.u32 2147483648, %v1763_v49  ;;  %v1774_v22 = vand.u32 2147483647, %v1763_v49  ;;  %v1797_v39 = vld [vmem:[%s3758_s13] sm:$0xff] }
 0x186   :  { %v1288_v0 = vpop.f32.mrf.mxu3  ;;  %v3495_v14 = vmul.f32 %v1283_v20, %v931_v21  ;;  %v549_v20 = vmul.f32 1.442695, %v487_v62  ;;  %vm1770_vm15 = vweird.f32 %v1763_v49 }
 0x187   :  { %v677_v3 = vadd.f32 %v642_v36, %v421_v47  ;;  %v1777_v43 = vor.u32 1.1754944e-38, %v1776_v58  ;;  %vm1775_vm3 = vcmp.eq.f32.partialorder %v1774_v22, 8.507059e+37  ;;  %v423_v47 = vmax.f32 %v3485_v46, 0.0 }
 0x188   :  { %2283 = vmatmul.msk.f32.gmra.mxu2 %vm151_vm0, %v2251_v63  ;;  %2517 = vpow2.f32 %v549_v20  ;;  %v2037_v22 = vpack.c.bf16 %v3483_v15, %v3474_v12 }
 0x189   :  { %2519 = vlog2.f32 %v582_v55  ;;  %v2254_v34 = vadd.f32 -0.6931472, %v677_v3  ;;  %v424_v3 = vmax.f32 %v3497_v48, 0.0 }
 0x18a   :  { %v2514_v28 = vpop.eup %2513 }
 0x18b   :  { %v854_v45 = vpop.f32.mrf.mxu2  ;;  %v2516_v10 = vpop.eup %2515  ;;  %v3515_v35 = vadd.f32 1.0, %v2514_v28 }
 0x18c   :  { %v932_v24 = vmul.f32 0.35355338, %v854_v45  ;;  %v1766_v7 = vmul.f32 %v2516_v10, %v1763_v49  ;;  %vm1771_vm12 = vweird.f32 %v2516_v10 }
 0x18d   :  { %2521 = vrcp.f32 %v3515_v35  ;;  %vm1772_vm2 = vmor %vm1770_vm15, %vm1771_vm12  ;;  %v1791_v32 = vand.u32 2147483648, %v3515_v35  ;;  %vm1785_vm5 = vweird.f32 %v3515_v35 }
 0x18e   :  { %v1290_v59 = vpop.f32.mrf.mxu3  ;;  %v3510_v1 = vmul.f32 %v1285_v26, %v932_v24  ;;  %v2518_v29 = vpop.eup %2517  ;;  %v1767_v21 = vsub.f32 1.0, %v1766_v7  ;;  %2523 = vpow2.f32 %v551_v44  ;;  %v1789_v44 = vand.u32 2147483647, %v3515_v35 }
 0x18f   :  { %v583_v9 = vadd.f32 1.0, %v2518_v29  ;;  %v2520_v62 = vpop.eup %2519  ;;  %v1792_v36 = vor.u32 1.1754944e-38, %v1791_v32 }
 0x190   :  { %2284 = vmatmul.msk.f32.gmra.mxu2 %vm151_vm0, %v2252_v38  ;;  %v1768_v31 = vmul.f32 %v2516_v10, %v1767_v21  ;;  %v644_v20 = vmul.f32 0.6931472, %v2520_v62  ;;  %vm1790_vm7 = vcmp.eq.f32.partialorder %v1789_v44, 8.507059e+37 }
 0x191   :  { %2525 = vlog2.f32 %v583_v9 }
 0x192   :  { %v1769_v18 = vadd.f32 %v2516_v10, %v1768_v31 }
 0x193   :  { %2340 = vmatmul.msk.bf16.gmra.mxu3 %vm82_vm1, %v1195_v57  ;;  %v857_v26 = vpop.f32.mrf.mxu2  ;;  %v678_v57 = vadd.f32 %v644_v20, %v422_v2 }
 0x194   :  { %v933_v33 = vmul.f32 0.35355338, %v857_v26  ;;  %v1773_v8 = vsel %vm1772_vm2, %v2516_v10, %v1769_v18 }
 0x195   :  { %v1778_v49 = vsel %vm1775_vm3, %v1777_v43, %v1773_v8  ;;  %v2255_v10 = vadd.f32 -0.6931472, %v678_v57  ;;  %v2038_v8 = vpack.c.bf16 %v3510_v1, %v3495_v14 }
 0x196   :  { %v3518_v11 = vpop.f32.mrf.mxu3  ;;  %v3520_v63 = vmul.f32 %v1288_v0, %v933_v33  ;;  %v2522_v0 = vpop.eup %2521  ;;  %v1795_v54 = vmul.f32 %v1778_v49, %v3489_v37 }
 0x197   :  { %v2524_v60 = vpop.eup %2523  ;;  %v1781_v45 = vmul.f32 %v2522_v0, %v3515_v35  ;;  %vm1786_vm4 = vweird.f32 %v2522_v0 }
 0x198   :  { %2285 = vmatmul.msk.f32.gmra.mxu2 %vm151_vm0, %v2253_v6  ;;  %v584_v28 = vadd.f32 1.0, %v2524_v60  ;;  %1822 = vmatpush.msra.mxu0 %v1795_v54  ;;  %v2526_v37 = vpop.eup %2525  ;;  %vm1787_vm6 = vmor %vm1785_vm5, %vm1786_vm4 }
 0x199   :  { %v1782_v55 = vsub.f32 1.0, %v1781_v45  ;;  %2352 = vmatmul.msk.f32.vlgmr.msra.gmra.mxu0 %vm151_vm0, %v1797_v39  ;;  %v646_v29 = vmul.f32 0.6931472, %v2526_v37 }
 0x19a   :  { %2527 = vlog2.f32 %v584_v28 }
 0x19b   :  { %v860_v23 = vpop.f32.mrf.mxu2  ;;  %v1783_v51 = vmul.f32 %v2522_v0, %v1782_v55  ;;  %v679_v35 = vadd.f32 %v646_v29, %v423_v47 }
 0x19c   :  { %v934_v38 = vmul.f32 0.35355338, %v860_v23 }
 0x19d   :  { %v2256_v9 = vadd.f32 -0.6931472, %v679_v35 }
 0x19e   :  { %v1295_v24 = vpop.f32.mrf.mxu3  ;;  %v3536_v42 = vmul.f32 %v1290_v59, %v934_v38  ;;  %v1784_v59 = vadd.f32 %v2522_v0, %v1783_v51 }
 0x1a0   :  { %2286 = vmatmul.msk.f32.gmra.mxu2 %vm151_vm0, %v2254_v34  ;;  %v1788_v6 = vsel %vm1787_vm6, %v2522_v0, %v1784_v59  ;;  %v2528_v46 = vpop.eup %2527  ;;  %v2039_v57 = vpack.c.bf16 %v3536_v42, %v3520_v63 }
 0x1a1   :  { %v1793_v33 = vsel %vm1790_vm7, %v1792_v36, %v1788_v6  ;;  %v648_v62 = vmul.f32 0.6931472, %v2528_v46 }
 0x1a2   :  { %v1796_v21 = vmul.f32 %v1793_v33, %v3501_v30 }
 0x1a3   :  { %2341 = vmatmul.msk.bf16.gmra.mxu3 %vm82_vm1, %v1196_v53  ;;  %v863_v26 = vpop.f32.mrf.mxu2  ;;  %v680_v18 = vadd.f32 %v648_v62, %v424_v3 }
 0x1a4   :  { %v935_v7 = vmul.f32 0.35355338, %v863_v26  ;;  %1842 = vmatpush.msrb.mxu0 %v1796_v21 }
 0x1a5   :  { %2353 = vmatmul.msk.f32.vlgmr.msrb.gmra.mxu0 %vm151_vm0, %v1797_v39  ;;  %v2257_v34 = vadd.f32 -0.6931472, %v680_v18 }
 0x1a6   :  { %v1298_v19 = vpop.f32.mrf.mxu3  ;;  %v3550_v61 = vmul.f32 %v3518_v11, %v935_v7  ;;  %v2035_v11 = vpack.c.bf16 %v3437_v5, %v3426_v25 }
 0x1a8   :  { %2287 = vmatmul.msk.f32.gmra.mxu2 %vm151_vm0, %v2255_v10 }
 0x1ab   :  { %v866_v58 = vpop.f32.mrf.mxu2 }
 0x1ac   :  { %v936_v31 = vmul.f32 0.35355338, %v866_v58 }
 0x1ae   :  { %v1300_v30 = vpop.f32.mrf.mxu3  ;;  %v3557_v2 = vmul.f32 %v1295_v24, %v936_v31 }
 0x1b0   :  { %2288 = vmatmul.msk.f32.gmra.mxu2 %vm151_vm0, %v2256_v9  ;;  %v2040_v10 = vpack.c.bf16 %v3557_v2, %v3550_v61 }
 0x1b3   :  { %v869_v0 = vpop.f32.mrf.mxu2 }
 0x1b4   :  { %v937_v20 = vmul.f32 0.35355338, %v869_v0 }
 0x1b6   :  { %v1303_v48 = vpop.f32.mrf.mxu3  ;;  %v3562_v43 = vmul.f32 %v1298_v19, %v937_v20 }
 0x1b8   :  { %2289 = vmatmul.msk.f32.gmra.mxu2 %vm151_vm0, %v2257_v34 }
 0x1bb   :  { %v872_v23 = vpop.f32.mrf.mxu2 }
 0x1bc   :  { %v938_v60 = vmul.f32 0.35355338, %v872_v23 }
 0x1be   :  { %v3567_v45 = vmul.f32 %v1300_v30, %v938_v60  ;;  %v1305_v38 = vpop.f32.mrf.mxu3 }
 0x1c0   :  { %v2041_v4 = vpack.c.bf16 %v3567_v45, %v3562_v43 }
 0x1c3   :  { %v875_v13 = vpop.f32.mrf.mxu2 }
 0x1c4   :  { %v939_v49 = vmul.f32 0.35355338, %v875_v13 }
 0x1c6   :  { %v3571_v24 = vmul.f32 %v1303_v48, %v939_v49  ;;  %v1308_v54 = vpop.f32.mrf.mxu3 }
 0x1cb   :  { %v878_v55 = vpop.f32.mrf.mxu2 }
 0x1cc   :  { %v940_v39 = vmul.f32 0.35355338, %v878_v55 }
 0x1ce   :  { %v3575_v32 = vmul.f32 %v1305_v38, %v940_v39  ;;  %v1310_v53 = vpop.f32.mrf.mxu3 }
 0x1d0   :  { %v2042_v30 = vpack.c.bf16 %v3575_v32, %v3571_v24 }
 0x1d3   :  { %v881_v28 = vpop.f32.mrf.mxu2 }
 0x1d4   :  { %v941_v51 = vmul.f32 0.35355338, %v881_v28 }
 0x1d6   :  { %v3577_v44 = vmul.f32 %v1308_v54, %v941_v51  ;;  %v1313_v47 = vpop.f32.mrf.mxu3 }
 0x1db   :  { %v884_v37 = vpop.f32.mrf.mxu2 }
 0x1dc   :  { %v942_v59 = vmul.f32 0.35355338, %v884_v37 }
 0x1de   :  { %v3581_v36 = vmul.f32 %v1310_v53, %v942_v59  ;;  %v1315_v7 = vpop.f32.mrf.mxu3 }
 0x1e0   :  { %v2043_v23 = vpack.c.bf16 %v3581_v36, %v3577_v44 }
 0x1e3   :  { %v887_v26 = vpop.f32.mrf.mxu2 }
 0x1e4   :  { %v943_v29 = vmul.f32 0.35355338, %v887_v26 }
 0x1e6   :  { %v3583_v6 = vmul.f32 %v1313_v47, %v943_v29  ;;  %v1318_v35 = vpop.f32.mrf.mxu3 }
 0x1eb   :  { %v890_v33 = vpop.f32.mrf.mxu2 }
 0x1ec   :  { %v944_v19 = vmul.f32 0.35355338, %v890_v33 }
 0x1ee   :  { %v3585_v21 = vmul.f32 %v1315_v7, %v944_v19  ;;  %v1320_v9 = vpop.f32.mrf.mxu3 }
 0x1f0   :  { %v2044_v60 = vpack.c.bf16 %v3585_v21, %v3583_v6 }
 0x1f3   :  { %v893_v46 = vpop.f32.mrf.mxu2 }
 0x1f4   :  { %v945_v3 = vmul.f32 0.35355338, %v893_v46 }
 0x1f6   :  { %v3587_v58 = vmul.f32 %v1318_v35, %v945_v3  ;;  %v1323_v20 = vpop.f32.mrf.mxu3 }
 0x1fb   :  { %v896_v62 = vpop.f32.mrf.mxu2 }
 0x1fc   :  { %v946_v31 = vmul.f32 0.35355338, %v896_v62 }
 0x1fe   :  { %v3591_v18 = vmul.f32 %v1320_v9, %v946_v31  ;;  %v3602_v55 = vpop.f32.mrf.mxu3 }
 0x200   :  { %v2045_v26 = vpack.c.bf16 %v3591_v18, %v3587_v58 }
 0x203   :  { %v899_v0 = vpop.f32.mrf.mxu2 }
 0x204   :  { %v947_v34 = vmul.f32 0.35355338, %v899_v0 }
 0x206   :  { %v3593_v48 = vmul.f32 %v1323_v20, %v947_v34  ;;  %v3607_v47 = vpop.f32.mrf.mxu3 }
 0x20b   :  { %v3599_v38 = vpop.f32.mrf.mxu2 }
 0x20c   :  { %v948_v12 = vmul.f32 0.35355338, %v3599_v38 }
 0x20e   :  { %v1330_v9 = vpop.f32.mrf.mxu3  ;;  %v1368_v5 = vmul.f32 %v3602_v55, %v948_v12  ;;  %v2094_v12 = vld [vmem:[%s3765_s20 + $0x38] sm:$0xff] }
 0x213   :  { %v3604_v28 = vpop.f32.mrf.mxu2 }
 0x214   :  { %v949_v56 = vmul.f32 0.35355338, %v3604_v28 }
 0x216   :  { %v1824_v13 = vpop.f32.mrf.mxu0  ;;  %v1369_v25 = vmul.f32 %v3607_v47, %v949_v56 }
 0x217   :  { %v1825_v49 = vadd.f32 %v1824_v13, %v3462_v17 }
 0x219   :  { %v2354_v54 = vmul.f32 -1.442695, %v1825_v49 }
 0x21b   :  { %2529 = vpow2.f32 %v2354_v54  ;;  %v908_v7 = vpop.f32.mrf.mxu2 }
 0x21c   :  { %v950_v42 = vmul.f32 0.35355338, %v908_v7  ;;  %v1981_v7 = vpop.permute.xlu0 %1980 }
 0x21e   :  { %v1370_v15 = vmul.f32 %v1330_v9, %v950_v42 }
 0x221   :  { %v2530_v51 = vpop.eup %2529 }
 0x222   :  { %v1844_v39 = vpop.f32.mrf.mxu0  ;;  %v1853_v59 = vadd.f32 1.0, %v2530_v51 }
 0x223   :  { %v1845_v53 = vadd.f32 %v1844_v39, %v3462_v17  ;;  %v911_v20 = vpop.f32.mrf.mxu2 }
 0x224   :  { %v1866_v3 = vand.u32 2147483648, %v1853_v59  ;;  %v1864_v62 = vand.u32 2147483647, %v1853_v59  ;;  %vm1860_vm8 = vweird.f32 %v1853_v59  ;;  %v951_v14 = vmul.f32 0.35355338, %v911_v20 }
 0x225   :  { %v2355_v37 = vmul.f32 -1.442695, %v1845_v53 }
 0x226   :  { %v1867_v34 = vor.u32 1.1754944e-38, %v1866_v3  ;;  %vm1865_vm10 = vcmp.eq.f32.partialorder %v1864_v62, 8.507059e+37 }
 0x227   :  { %2531 = vpow2.f32 %v2355_v37 }
 0x228   :  { %2533 = vrcp.f32 %v1853_v59 }
 0x22b   :  { %v914_v62 = vpop.f32.mrf.mxu2 }
 0x22c   :  { %v952_v45 = vmul.f32 0.35355338, %v914_v62  ;;  %v2017_v62 = vld [vmem:[%s3751_s6] sm:$0x3]  ;;  %s2581_s6 = smov 8  }
 0x22d   :  { %v2532_v29 = vpop.eup %2531 }
 0x22e   :  { %v2534_v33 = vpop.eup %2533  ;;  %v1854_v19 = vadd.f32 1.0, %v2532_v29  ;;  %v1887_v29 = vld [vmem:[%s3760_s15] sm:$0xff]  ;;  %s2579_s15 = smov [#allocation5]  }
 0x22f   :  { %v1856_v35 = vmul.f32 %v2534_v33, %v1853_v59  ;;  %vm1861_vm1 = vweird.f32 %v2534_v33  ;;  %v1333_v59 = vpop.f32.mrf.mxu3  ;;  %s2178_s29 = sshll.u32 %s2579_s15, 4  ;;  %s2179_s29 = int_to_ptr.vmem [resolvable:$true] %s2178_s29 }
 0x230   :  { %2535 = vrcp.f32 %v1854_v19  ;;  %vm1862_vm9 = vmor %vm1860_vm8, %vm1861_vm1  ;;  %v1879_v41 = vand.u32 2147483647, %v1854_v19  ;;  %vm1875_vm12 = vweird.f32 %v1854_v19  ;;  %v1371_v52 = vmul.f32 %v1333_v59, %v951_v14 }
 0x231   :  { %v1857_v46 = vsub.f32 1.0, %v1856_v35  ;;  %v1881_v35 = vand.u32 2147483648, %v1854_v19 }
 0x232   :  { %vm1880_vm14 = vcmp.eq.f32.partialorder %v1879_v41, 8.507059e+37 }
 0x233   :  { %v1858_v17 = vmul.f32 %v2534_v33, %v1857_v46 }
 0x235   :  { %v1859_v31 = vadd.f32 %v2534_v33, %v1858_v17 }
 0x236   :  { %v2536_v0 = vpop.eup %2535 }
 0x237   :  { %v1863_v13 = vsel %vm1862_vm9, %v2534_v33, %v1859_v31  ;;  %v1871_v54 = vmul.f32 %v2536_v0, %v1854_v19  ;;  %vm1876_vm11 = vweird.f32 %v2536_v0  ;;  %v1882_v33 = vor.u32 1.1754944e-38, %v1881_v35  ;;  %v917_v19 = vpop.f32.mrf.mxu2 }
 0x238   :  { %v1868_v39 = vsel %vm1865_vm10, %v1867_v34, %v1863_v13  ;;  %vm1877_vm13 = vmor %vm1875_vm12, %vm1876_vm11  ;;  %v1335_v34 = vpop.f32.mrf.mxu3  ;;  %v953_v61 = vmul.f32 0.35355338, %v917_v19 }
 0x239   :  { %v1885_v51 = vmul.f32 %v1868_v39, %v1825_v49  ;;  %v1872_v37 = vsub.f32 1.0, %v1871_v54 }
 0x23b   :  { %v1873_v46 = vmul.f32 %v2536_v0, %v1872_v37  ;;  %1912 = vmatpush.msra.mxu0 %v1885_v51 }
 0x23c   :  { %2356 = vmatmul.msk.f32.vlgmr.msra.gmra.mxu0 %vm151_vm0, %v1887_v29 }
 0x23d   :  { %v1874_v3 = vadd.f32 %v2536_v0, %v1873_v46  ;;  %v2001_v46 = vpop.permute.xlu1 %2000 }
 0x23e   :  { %v2003_v19 = vperm.slane %v2001_v46, 0 }
 0x23f   :  { %v1878_v17 = vsel %vm1877_vm13, %v2536_v0, %v1874_v3  ;;  %v2006_v3 = vld [vmem:[%s3786_s30] sm:$0x3]  ;;  %vm2095_vm13 = vcmask 523264  }
 0x240   :  { %v1883_v49 = vsel %vm1880_vm14, %v1882_v33, %v1878_v17  ;;  %v1338_v41 = vpop.f32.mrf.mxu3  ;;  %v3787_v33 = vlaneseq }
 0x241   :  { %v1886_v31 = vmul.f32 %v1883_v49, %v1845_v53  ;;  %v920_v53 = vpop.f32.mrf.mxu2  ;;  %v1373_v1 = vmul.f32 %v1338_v41, %v953_v61 }
 0x242   :  { %v954_v43 = vmul.f32 0.35355338, %v920_v53  ;;  %v2015_v17 = vshrl.u32 %v3787_v33, 7  ;;  %v2008_v53 = vperm.slane %v2006_v3, 0 }
 0x243   :  { %1932 = vmatpush.msrb.mxu0 %v1886_v31 }
 0x244   :  { %2357 = vmatmul.msk.f32.vlgmr.msrb.gmra.mxu0 %vm151_vm0, %v1887_v29 }
 0x245   :  { %2050 = vmatpush.bf16.msra.mxu0 %v2041_v4 }
 0x248   :  { %v1340_v2 = vpop.f32.mrf.mxu3 }
 0x249   :  { %2051 = vmatpush.bf16.msra.mxu0 %v2040_v10  ;;  %v1374_v63 = vmul.f32 %v1340_v2, %v954_v43  ;;  %v2016_v2 = vadd.s32 8, %v2015_v17 }
 0x24b   :  { %v2049_v4 = vpack.c.bf16 %v1374_v63, %v1373_v1 }
 0x24d   :  { %2052 = vmatpush.bf16.msra.mxu0 %v2039_v57 }
 0x251   :  { %2053 = vmatpush.bf16.msra.mxu0 %v2038_v8  ;;  %v1372_v8 = vmul.f32 %v1335_v34, %v952_v45  ;;  %v2018_v45 = vperm.slane %v2017_v62, 0 }
 0x253   :  { %vm2020_vm1 = vcmp.eq.s32.totalorder %v2015_v17, %v2018_v45  ;;  %vm2022_vm8 = vcmp.eq.s32.totalorder %v2016_v2, %v2018_v45 }
 0x254   :  { %vm2360_vm9 = vmpackc.low %vm2022_vm8, %vm2020_vm1 }
 0x255   :  { %2054 = vmatpush.bf16.msra.mxu0 %v2037_v22  ;;  %v2047_v22 = vpack.c.bf16 %v1370_v15, %v1369_v25 }
 0x259   :  { %2055 = vmatpush.bf16.msra.mxu0 %v2036_v50  ;;  %v2048_v50 = vpack.c.bf16 %v1372_v8, %v1371_v52 }
 0x25d   :  { %2056 = vmatpush.bf16.msra.mxu0 %v2035_v11  ;;  %v2046_v11 = vpack.c.bf16 %v1368_v5, %v3593_v48  ;;  %v2092_v5 = vld [vmem:[%s3765_s20 + $0x28] sm:$0xff] }
 0x261   :  { %2057 = vmatpush.bf16.msra.mxu0 %v2034_v16 }
 0x265   :  { %2064 = vmatpush.bf16.msrb.mxu0 %v2049_v4 }
 0x269   :  { %2065 = vmatpush.bf16.msrb.mxu0 %v2048_v50  ;;  %v2093_v50 = vld [vmem:[%s3765_s20 + $0x30] sm:$0xff] }
 0x26d   :  { %2066 = vmatpush.bf16.msrb.mxu0 %v2047_v22 }
 0x271   :  { %2067 = vmatpush.bf16.msrb.mxu0 %v2046_v11  ;;  %v2091_v11 = vld [vmem:[%s3765_s20 + $0x20] sm:$0xff] }
 0x275   :  { %2068 = vmatpush.bf16.msrb.mxu0 %v2045_v26 }
 0x279   :  { %2069 = vmatpush.bf16.msrb.mxu0 %v2044_v60 }
 0x27d   :  { %2070 = vmatpush.bf16.msrb.mxu0 %v2043_v23 }
 0x281   :  { %2071 = vmatpush.bf16.msrb.mxu0 %v2042_v30 }
 0x2b9   :  { %v1914_v27 = vpop.f32.mrf.mxu0 }
 0x2ba   :  { %v1915_v16 = vadd.f32 %v1914_v27, %v1892_v40  ;;  %v2009_v27 = vperm.slane %v2006_v3, 1 }
 0x2bc   :  { %v2358_v57 = vmul.f32 -1.442695, %v1915_v16 }
 0x2be   :  { %2537 = vpow2.f32 %v2358_v57  ;;  %v2090_v57 = vld [vmem:[%s3765_s20 + $0x18] sm:$0xff] }
 0x2c1   :  { %v1934_v18 = vpop.f32.mrf.mxu0 }
 0x2c2   :  { %v1935_v48 = vadd.f32 %v1934_v18, %v1892_v40 }
 0x2c4   :  { %v2538_v10 = vpop.eup %2537  ;;  %v2359_v6 = vmul.f32 -1.442695, %v1935_v48 }
 0x2c5   :  { %v1943_v58 = vadd.f32 1.0, %v2538_v10 }
 0x2c7   :  { %2539 = vrcp.f32 %v1943_v58  ;;  %v1956_v36 = vand.u32 2147483648, %v1943_v58  ;;  %v1954_v24 = vand.u32 2147483647, %v1943_v58  ;;  %vm1950_vm15 = vweird.f32 %v1943_v58 }
 0x2c8   :  { %2541 = vpow2.f32 %v2359_v6 }
 0x2c9   :  { %v1957_v55 = vor.u32 1.1754944e-38, %v1956_v36  ;;  %vm1955_vm3 = vcmp.eq.f32.partialorder %v1954_v24, 8.507059e+37  ;;  %v2143_v36 = vld [vmem:[%s3764_s19 + $0x70] sm:$0xff]  ;;  %v2141_v24 = vld [vmem:[%s3764_s19 + $0x60] sm:$0xff] }
 0x2cd   :  { %v2540_v21 = vpop.eup %2539 }
 0x2ce   :  { %v1946_v60 = vmul.f32 %v2540_v21, %v1943_v58  ;;  %vm1951_vm0 = vweird.f32 %v2540_v21  ;;  %v2542_v32 = vpop.eup %2541  ;;  %v2089_v58 = vld [vmem:[%s3765_s20 + $0x10] sm:$0xff] }
 0x2cf   :  { %v1944_v38 = vadd.f32 1.0, %v2542_v32  ;;  %vm1952_vm2 = vmor %vm1950_vm15, %vm1951_vm0  ;;  %v2140_v32 = vld [vmem:[%s3764_s19 + $0x58] sm:$0xff] }
 0x2d0   :  { %v1947_v44 = vsub.f32 1.0, %v1946_v60 }
 0x2d1   :  { %2543 = vrcp.f32 %v1944_v38  ;;  %v1971_v37 = vand.u32 2147483648, %v1944_v38  ;;  %v1969_v35 = vand.u32 2147483647, %v1944_v38  ;;  %vm1965_vm5 = vweird.f32 %v1944_v38 }
 0x2d2   :  { %v1948_v23 = vmul.f32 %v2540_v21, %v1947_v44  ;;  %v2144_v44 = vld [vmem:[%s3764_s19 + $0x78] sm:$0xff] }
 0x2d3   :  { %v1972_v34 = vor.u32 1.1754944e-38, %v1971_v37  ;;  %vm1970_vm7 = vcmp.eq.f32.partialorder %v1969_v35, 8.507059e+37 }
 0x2d4   :  { %v1949_v30 = vadd.f32 %v2540_v21, %v1948_v23  ;;  %v2142_v23 = vld [vmem:[%s3764_s19 + $0x68] sm:$0xff] }
 0x2d6   :  { %v1953_v28 = vsel %vm1952_vm2, %v2540_v21, %v1949_v30  ;;  %v2087_v21 = vld [vmem:[%s3765_s20] sm:$0xff]  ;;  %v2139_v30 = vld [vmem:[%s3764_s19 + $0x50] sm:$0xff] }
 0x2d7   :  { %v1958_v47 = vsel %vm1955_vm3, %v1957_v55, %v1953_v28  ;;  %v2544_v0 = vpop.eup %2543  ;;  %v2137_v55 = vld [vmem:[%s3764_s19 + $0x40] sm:$0xff] }
 0x2d8   :  { %v1975_v26 = vmul.f32 %v1958_v47, %v1915_v16  ;;  %v1961_v13 = vmul.f32 %v2544_v0, %v1944_v38  ;;  %vm1966_vm4 = vweird.f32 %v2544_v0  ;;  %v2019_v16 = vperm.slane %v2017_v62, 1  ;;  %v2138_v38 = vld [vmem:[%s3764_s19 + $0x48] sm:$0xff]  ;;  %v2085_v28 = vld [vmem:[%s3788_s22] sm:$0xff]  ;;  %v2136_v47 = vld [vmem:[%s3764_s19 + $0x38] sm:$0xff] }
 0x2d9   :  { %vm1967_vm6 = vmor %vm1965_vm5, %vm1966_vm4 }
 0x2da   :  { %v1983_v9 = vmul.f32 %v1981_v7, %v1975_v26  ;;  %v1962_v39 = vsub.f32 1.0, %v1961_v13  ;;  %vm2021_vm10 = vcmp.eq.s32.totalorder %v2015_v17, %v2019_v16  ;;  %vm2023_vm11 = vcmp.eq.s32.totalorder %v2016_v2, %v2019_v16  ;;  %v2135_v26 = vld [vmem:[%s3764_s19 + $0x30] sm:$0xff] }
 0x2db   :  { %vm2363_vm12 = vmpackc.low %vm2023_vm11, %vm2021_vm10  ;;  %v2131_v13 = vld [vmem:[%s3764_s19 + $0x10] sm:$0xff] }
 0x2dc   :  { %v1985_v20 = vrot.slane %v1983_v9, 4  ;;  %v1963_v29 = vmul.f32 %v2544_v0, %v1962_v39  ;;  %v2129_v39 = vld [vmem:[%s3764_s19] sm:$0xff] }
 0x2de   :  { %v1986_v54 = vadd.f32 %v1985_v20, %v1983_v9  ;;  %v1964_v49 = vadd.f32 %v2544_v0, %v1963_v29  ;;  %v2133_v9 = vld [vmem:[%s3764_s19 + $0x20] sm:$0xff]  ;;  %v2132_v20 = vld [vmem:[%s3764_s19 + $0x18] sm:$0xff] }
 0x2e0   :  { %v1987_v51 = vrot.slane %v1986_v54, 2  ;;  %v1968_v41 = vsel %vm1967_vm6, %v2544_v0, %v1964_v49  ;;  %v2086_v0 = vld [vmem:[%s3788_s22 + $0x8] sm:$0xff] }
 0x2e1   :  { %v1973_v61 = vsel %vm1970_vm7, %v1972_v34, %v1968_v41 }
 0x2e2   :  { %v1988_v59 = vadd.f32 %v1987_v51, %v1986_v54  ;;  %v1976_v63 = vmul.f32 %v1973_v61, %v1935_v48  ;;  %v2088_v48 = vld [vmem:[%s3765_s20 + $0x8] sm:$0xff] }
 0x2e3   :  { %v2130_v54 = vld [vmem:[%s3764_s19 + $0x8] sm:$0xff] }
 0x2e4   :  { %v1989_v31 = vrot.slane %v1988_v59, 1  ;;  %v1984_v1 = vmul.f32 %v1981_v7, %v1976_v63  ;;  %v2134_v7 = vld [vmem:[%s3764_s19 + $0x28] sm:$0xff] }
 0x2e6   :  { %v1990_v43 = vadd.f32 %v1989_v31, %v1988_v59  ;;  %v1991_v8 = vrot.slane %v1984_v1, 4 }
 0x2e8   :  { %v2004_v14 = vadd.f32 %v2003_v19, %v1990_v43  ;;  %v1992_v56 = vadd.f32 %v1991_v8, %v1984_v1 }
 0x2ea   :  { %v2012_v42 = vmul.f32 %v2008_v53, %v2004_v14  ;;  %v1993_v15 = vrot.slane %v1992_v56, 2 }
 0x2ec   :  { %v2024_v4 = vperm.slane %v2012_v42, 0  ;;  %v1994_v25 = vadd.f32 %v1993_v15, %v1992_v56 }
 0x2ee   :  { %v2361_v52 = vpack.c.bf16 %v2024_v4, %v2024_v4  ;;  %v1995_v22 = vrot.slane %v1994_v25, 1 }
 0x2f0   :  { %2362 = vmatmul.msk.bf16.vlgmr.msra.gmra.mxu0 %vm2360_vm9, %v2361_v52  ;;  %v1996_v40 = vadd.f32 %v1995_v22, %v1994_v25 }
 0x2f1   :  { %2110 = vmatpush.msra.mxu0 %v2094_v12 }
 0x2f2   :  { %v2005_v10 = vadd.f32 %v2003_v19, %v1996_v40 }
 0x2f3   :  { %2111 = vmatpush.msra.mxu0 %v2093_v50 }
 0x2f4   :  { %v2013_v18 = vmul.f32 %v2009_v27, %v2005_v10 }
 0x2f5   :  { %2112 = vmatpush.msra.mxu0 %v2092_v5 }
 0x2f6   :  { %v2025_v6 = vperm.slane %v2013_v18, 0 }
 0x2f7   :  { %2113 = vmatpush.msra.mxu0 %v2091_v11 }
 0x2f8   :  { %v2364_v60 = vpack.c.bf16 %v2025_v6, %v2025_v6 }
 0x2f9   :  { %2114 = vmatpush.msra.mxu0 %v2090_v57 }
 0x2fb   :  { %2115 = vmatpush.msra.mxu0 %v2089_v58 }
 0x2fd   :  { %2116 = vmatpush.msra.mxu0 %v2088_v48 }
 0x2ff   :  { %2117 = vmatpush.msra.mxu0 %v2087_v21 }
 0x300   :  { %2365 = vmatmul.msk.bf16.vlgmr.msrb.gmra.mxu0 %vm2363_vm12, %v2364_v60 }
 0x301   :  { %2145 = vmatpush.msrb.mxu0 %v2144_v44 }
 0x303   :  { %2146 = vmatpush.msrb.mxu0 %v2143_v36 }
 0x305   :  { %2147 = vmatpush.msrb.mxu0 %v2142_v23 }
 0x307   :  { %2148 = vmatpush.msrb.mxu0 %v2141_v24 }
 0x309   :  { %2149 = vmatpush.msrb.mxu0 %v2140_v32 }
 0x30b   :  { %2150 = vmatpush.msrb.mxu0 %v2139_v30 }
 0x30d   :  { %2151 = vmatpush.msrb.mxu0 %v2138_v38 }
 0x30f   :  { %2152 = vmatpush.msrb.mxu0 %v2137_v55 }
 0x310   :  { %2366 = vmatmul.msk.f32.vlgmr.msra.gmra.mxu0 %vm2095_vm13, %v2085_v28 }
 0x311   :  { %2153 = vmatpush.msrb.mxu0 %v2136_v47 }
 0x313   :  { %2154 = vmatpush.msrb.mxu0 %v2135_v26 }
 0x315   :  { %2155 = vmatpush.msrb.mxu0 %v2134_v7 }
 0x317   :  { %2156 = vmatpush.msrb.mxu0 %v2133_v9 }
 0x318   :  { %2367 = vmatmul.msk.f32.gmra.mxu0 %vm2095_vm13, %v2086_v0 }
 0x319   :  { %2157 = vmatpush.msrb.mxu0 %v2132_v20 }
 0x31b   :  { %2158 = vmatpush.msrb.mxu0 %v2131_v13 }
 0x31d   :  { %2159 = vmatpush.msrb.mxu0 %v2130_v54 }
 0x31f   :  { %2160 = vmatpush.msrb.mxu0 %v2129_v39 }
 0x36d   :  { %v2059_v51 = vpop.f32.mrf.mxu0 }
 0x375   :  { %v2061_v37 = vpop.f32.mrf.mxu0 }
 0x37d   :  { %v2073_v29 = vpop.f32.mrf.mxu0 }
 0x37e   :  { %v2074_v35 = vadd.f32 %v2073_v29, %v2059_v51 }
 0x380   :  { %2161 = vmatmul.f32.vlgmr.msrb.gmra.mxu0 %v2074_v35 }
 0x385   :  { %v2075_v46 = vpop.f32.mrf.mxu0 }
 0x386   :  { %v2076_v59 = vadd.f32 %v2075_v46, %v2061_v37 }
 0x388   :  { %2164 = vmatmul.f32.gmra.mxu0 %v2076_v59 }
 0x38d   :  { %v2119_v3 = vpop.f32.mrf.mxu0 }
 0x38e   :  { %v2125_v49 = vmul.f32 0.125, %v2119_v3 }
 0x395   :  { %v2122_v33 = vpop.f32.mrf.mxu0 }
 0x396   :  { %v2126_v19 = vmul.f32 0.125, %v2122_v33 }
 0x3fd   :  { %v2162_v17 = vpop.f32.mrf.mxu0 }
 0x3fe   :  { %v2168_v62 = vmul.f32 0.25, %v2162_v17 }
 0x400   :  { %v2170_v31 = vadd.f32 %v2168_v62, %v2125_v49 }
 0x402   :  { %2172 = vst [vmem:[#allocation5] sm:$0xff] %v2170_v31 }
 0x405   :  { %v2165_v34 = vpop.f32.mrf.mxu0 }
 0x406   :  { %v2169_v41 = vmul.f32 0.25, %v2165_v34 }
 0x408   :  { %v2171_v53 = vadd.f32 %v2169_v41, %v2126_v19 }
 0x40a   :  { %2173 = vst [vmem:[#allocation5 + $0x8] sm:$0xff] %v2171_v53 }
 0x40b   :  { %2186 = dma.vmem_to_hbm [thread:$0]  %s2179_s29, 256, %s2181_s0, [#allocation6], %s2580_s14, %s2580_s14, %s2581_s6  }
 0x40c   :  { %2569 = dma.done.wait [#allocation6], 256  }
 0x40d   :  { %2570 = vsyncadd [#allocation6], 4294967040 }
 0x40e   :  { %2191 = vsyncpa [#allocation6], 1 }

</bundles_post_ra>
